<compile_context>
chip_gen: v7x
topology: tpu7x:2x2x1
jax: 0.10.0
libtpu: 0.0.40
codegen_flags: <defaults>
</compile_context>

<pallas_src>
import functools

import jax
import jax.numpy as jnp
from jax.experimental import pallas as pl
from jax.experimental.pallas import tpu as pltpu

# ---- module "parameters" (deterministic, from __init__) --------------------
NUM_BINS = 32
MINVAL, MAXVAL = 0.0, 1.0
SIGMA_RATIO = 1.0
_BIN_WIDTH = (MAXVAL - MINVAL) / (NUM_BINS - 1)
_SIGMA = _BIN_WIDTH * SIGMA_RATIO            # mean(diff(bin_centers)) * sigma_ratio
PRETERM = 1.0 / (2.0 * _SIGMA ** 2)          # = 480.5 for 32 bins on [0, 1]


def _round_up(x, m):
    return ((x + m - 1) // m) * m


def _mi_hist_kernel(yt_ref, yp_ref, pab_ref, *,
                    tile, tiles_per_chunk, n_valid, n_padded):
    """Accumulate the joint soft histogram over voxel tiles (voxels on lanes)."""
    ti = pl.program_id(2)

    @pl.when(ti == 0)
    def _init():
        # Output block is VMEM-resident across the reduction axis -> accumulator.
        pab_ref[...] = jnp.zeros_like(pab_ref)

    # Bin centers linspace(MINVAL, MAXVAL, NUM_BINS) on the sublane axis: (NUM_BINS, 1).
    vbc = (jax.lax.broadcasted_iota(jnp.int32, (NUM_BINS, 1), 0).astype(jnp.float32)
           * _BIN_WIDTH + MINVAL)

    yt = jnp.clip(yt_ref[0, 0], 0.0, MAXVAL)      # (1, tile)  voxels on lanes
    yp = jnp.clip(yp_ref[0, 0], 0.0, MAXVAL)      # (1, tile)

    # Gaussian soft binning, normalized per voxel (sublane reduction over bins).
    ia = jnp.exp(-PRETERM * (yt - vbc) ** 2)                     # (NUM_BINS, tile)
    ia = ia * (1.0 / jnp.sum(ia, axis=0, keepdims=True))
    ib = jnp.exp(-PRETERM * (yp - vbc) ** 2)                     # (NUM_BINS, tile)
    ib = ib * (1.0 / jnp.sum(ib, axis=0, keepdims=True))

    if n_padded != n_valid:
        # Zero the contribution of padded voxels (masking Ia alone suffices:
        # both pab and the derived marginals then only see real voxels).
        ci = pl.program_id(1)
        start = (ci * tiles_per_chunk + ti) * tile
        lane = jax.lax.broadcasted_iota(jnp.int32, (1, tile), 1)
        ia = jnp.where(lane + start < n_valid, ia, 0.0)

    # Joint histogram contribution: contract over the voxel (lane) axis on the MXU.
    pab_ref[0, 0] += jax.lax.dot_general(
        ia, ib, (((1,), (1,)), ((), ())),
        preferred_element_type=jnp.float32,
        precision=jax.lax.Precision.HIGHEST)


def mutual_information_loss(y_true, y_pred, *, tile=4096, num_chunks=None):
    """Pallas implementation of MutualInformation.forward: returns -mean_b MI_b."""
    assert y_true.shape == y_pred.shape
    b = y_true.shape[0]
    yt = jnp.reshape(y_true.astype(jnp.float32), (b, -1))
    yp = jnp.reshape(y_pred.astype(jnp.float32), (b, -1))
    n = yt.shape[1]

    # Lane-dense voxel tile (multiple of 128); shrink for small inputs.
    tile = _round_up(int(tile), 128)
    tile = max(128, min(tile, _round_up(n, 512)))

    if num_chunks is None:
        # Extra "parallel" voxel-chunk axis so both v7x TensorCores stay busy
        # when the batch axis alone cannot feed them.
        num_chunks = 2 if (b % 2 == 1 and n >= 2 * tile) else 1

    n_pad = _round_up(n, tile * num_chunks)
    if n_pad != n:
        pad = n_pad - n
        yt = jnp.pad(yt, ((0, 0), (0, pad)))
        yp = jnp.pad(yp, ((0, 0), (0, pad)))
    tiles_per_chunk = n_pad // (tile * num_chunks)
    num_blocks = num_chunks * tiles_per_chunk

    # (B, NB, 1, tile): last two block dims are (1, tile) -> (8,128)-legal & lane dense.
    yt4 = yt.reshape(b, num_blocks, 1, tile)
    yp4 = yp.reshape(b, num_blocks, 1, tile)

    kernel = functools.partial(_mi_hist_kernel, tile=tile,
                               tiles_per_chunk=tiles_per_chunk,
                               n_valid=n, n_padded=n_pad)

    in_idx = lambda bi, ci, ti: (bi, ci * tiles_per_chunk + ti, 0, 0)

    pab_parts = pl.pallas_call(
        kernel,
        out_shape=jax.ShapeDtypeStruct((b, num_chunks, NUM_BINS, NUM_BINS),
                                       jnp.float32),
        grid_spec=pltpu.PrefetchScalarGridSpec(
            num_scalar_prefetch=0,
            grid=(b, num_chunks, tiles_per_chunk),
            in_specs=[
                pl.BlockSpec((1, 1, 1, tile), in_idx),
                pl.BlockSpec((1, 1, 1, tile), in_idx),
            ],
            out_specs=pl.BlockSpec((1, 1, NUM_BINS, NUM_BINS),
                                   lambda bi, ci, ti: (bi, ci, 0, 0)),
        ),
        compiler_params=pltpu.CompilerParams(
            dimension_semantics=("parallel", "parallel", "arbitrary")),
    )(yt4, yp4)

    # Tiny epilogue (32x32 per batch item): combine partial histograms, derive
    # marginals as row/col sums of pab (exact because Ia/Ib rows sum to 1).
    pab = jnp.sum(pab_parts, axis=1) / n                    # (B, 32, 32)
    pa = jnp.sum(pab, axis=2, keepdims=True)                # (B, 32, 1)
    pb = jnp.sum(pab, axis=1, keepdims=True)                # (B, 1, 32)
    papb = pa * pb + 1e-6
    mi = jnp.sum(pab * jnp.log(pab / papb + 1e-6), axis=(1, 2))
    return -jnp.mean(mi)


def mutual_information_reference(y_true, y_pred):
    """Pure-JAX reference mirroring the PyTorch code path."""
    b = y_true.shape[0]
    yt = jnp.clip(y_true.reshape(b, -1).astype(jnp.float32), 0.0, MAXVAL)[..., None]
    yp = jnp.clip(y_pred.reshape(b, -1).astype(jnp.float32), 0.0, MAXVAL)[..., None]
    n = yt.shape[1]
    vbc = jnp.linspace(MINVAL, MAXVAL, NUM_BINS).reshape(1, 1, NUM_BINS)
    ia = jnp.exp(-PRETERM * (yt - vbc) ** 2)
    ia = ia / jnp.sum(ia, axis=-1, keepdims=True)
    ib = jnp.exp(-PRETERM * (yp - vbc) ** 2)
    ib = ib / jnp.sum(ib, axis=-1, keepdims=True)
    pab = jnp.einsum("bvi,bvj->bij", ia, ib,
                     precision=jax.lax.Precision.HIGHEST) / n
    pa = jnp.mean(ia, axis=1, keepdims=True)
    pb = jnp.mean(ib, axis=1, keepdims=True)
    papb = jnp.einsum("bxi,bxj->bij", pa, pb,
                      precision=jax.lax.Precision.HIGHEST) + 1e-6
    mi = jnp.sum(pab * jnp.log(pab / papb + 1e-6), axis=(1, 2))
    return -jnp.mean(mi)


if __name__ == "__main__":
    key = jax.random.PRNGKey(0)
    k1, k2, k3, k4, k5, k6 = jax.random.split(key, 6)

    # Case 1: NCHW images in [0, 1]; B=2, C=4, H=W=16 -> 1024 voxels per item.
    y_true = jax.random.uniform(k1, (2, 4, 16, 16), dtype=jnp.float32)
    y_pred = jnp.clip(y_true + 0.1 * jax.random.normal(k2, (2, 4, 16, 16)), 0.0, 1.0)
    loss = mutual_information_loss(y_true, y_pred)
    jax.block_until_ready(loss)
    ref = mutual_information_reference(y_true, y_pred)
    assert jnp.allclose(loss, ref, atol=3e-3, rtol=3e-3), (loss, ref)

    # Case 2: voxel count not a multiple of the tile -> exercises the pad+mask path.
    y_true2 = jax.random.uniform(k3, (2, 3, 15, 17), dtype=jnp.float32)
    y_pred2 = jnp.clip(y_true2 + 0.1 * jax.random.normal(k4, (2, 3, 15, 17)), 0.0, 1.0)
    loss2 = mutual_information_loss(y_true2, y_pred2)
    jax.block_until_ready(loss2)
    ref2 = mutual_information_reference(y_true2, y_pred2)
    assert jnp.allclose(loss2, ref2, atol=3e-3, rtol=3e-3), (loss2, ref2)

    # Case 3: odd batch + larger volume -> exercises the 2-chunk "parallel" path.
    y_true3 = jax.random.uniform(k5, (1, 1, 96, 96), dtype=jnp.float32)
    y_pred3 = jnp.clip(y_true3 + 0.1 * jax.random.normal(k6, (1, 1, 96, 96)), 0.0, 1.0)
    loss3 = mutual_information_loss(y_true3, y_pred3)
    jax.block_until_ready(loss3)
    ref3 = mutual_information_reference(y_true3, y_pred3)
    assert jnp.allclose(loss3, ref3, atol=3e-3, rtol=3e-3), (loss3, ref3)

    print("KERNEL_OK")
</pallas_src>

<mosaic_0001>
module attributes {stable_mosaic.version = 11 : i64} {
  func.func @_mi_hist_kernel(%arg0: i32, %arg1: i32, %arg2: i32, %arg3: memref<1x1x1x1024xf32, #tpu.memory_space<vmem>>, %arg4: memref<1x1x1x1024xf32, #tpu.memory_space<vmem>>, %arg5: memref<1x1x32x32xf32, #tpu.memory_space<vmem>>) attributes {dimension_semantics = [#tpu.dimension_semantics<parallel>, #tpu.dimension_semantics<parallel>, #tpu.dimension_semantics<arbitrary>], iteration_bounds = array<i64: 2, 1, 1>, scalar_prefetch = 0 : i64, scratch_operands = 0 : i64, tpu.core_type = #tpu.core_type<tc>, window_params = [{transform_indices = @transform_0, window_bounds = array<i64: 1, 1, 1, 1024>}, {transform_indices = @transform_1, window_bounds = array<i64: 1, 1, 1, 1024>}, {transform_indices = @transform_2, window_bounds = array<i64: 1, 1, 32, 32>}]} {
    %c0_i32 = arith.constant 0 : i32
    %0 = arith.cmpi eq, %arg2, %c0_i32 : i32
    %1 = arith.extui %0 : i1 to i32
    %c0_i32_0 = arith.constant 0 : i32
    %2 = arith.cmpi ne, %1, %c0_i32_0 : i32
    scf.if %2 {
      %cst_28 = arith.constant 0.000000e+00 : f32
      %54 = vector.broadcast %cst_28 : f32 to vector<1x1x32x32xf32>
      %c0_29 = arith.constant 0 : index
      %c0_30 = arith.constant 0 : index
      %c0_31 = arith.constant 0 : index
      %c0_32 = arith.constant 0 : index
      %55 = vector.load %arg5[%c0_29, %c0_30, %c0_31, %c0_32] : memref<1x1x32x32xf32, #tpu.memory_space<vmem>>, vector<1x1x32x32xf32>
      tpu.vector_store %arg5[%c0_29, %c0_30, %c0_31, %c0_32], %54 {strides = array<i32>} : memref<1x1x32x32xf32, #tpu.memory_space<vmem>>, vector<1x1x32x32xf32>,
    } else {
    }
    %3 = tpu.iota {dimensions = array<i32: 0>} : vector<32x1xi32>
    %4 = arith.sitofp %3 : vector<32x1xi32> to vector<32x1xf32>
    %cst = arith.constant 0.0322580636 : f32
    %5 = vector.broadcast %cst : f32 to vector<32x1xf32>
    %6 = arith.mulf %4, %5 : vector<32x1xf32>
    %cst_1 = arith.constant 0.000000e+00 : f32
    %7 = vector.broadcast %cst_1 : f32 to vector<32x1xf32>
    %8 = arith.addf %6, %7 : vector<32x1xf32>
    %c0 = arith.constant 0 : index
    %c0_2 = arith.constant 0 : index
    %c0_3 = arith.constant 0 : index
    %c0_4 = arith.constant 0 : index
    %9 = vector.load %arg3[%c0, %c0_2, %c0_3, %c0_4] : memref<1x1x1x1024xf32, #tpu.memory_space<vmem>>, vector<1x1x1x1024xf32>
    %10 = vector.shape_cast %9 : vector<1x1x1x1024xf32> to vector<1x1024xf32>
    %cst_5 = arith.constant 0.000000e+00 : f32
    %cst_6 = arith.constant 1.000000e+00 : f32
    %11 = vector.broadcast %cst_5 : f32 to vector<1x1024xf32>
    %12 = arith.maximumf %11, %10 : vector<1x1024xf32>
    %13 = vector.broadcast %cst_6 : f32 to vector<1x1024xf32>
    %14 = arith.minimumf %13, %12 : vector<1x1024xf32>
    %c0_7 = arith.constant 0 : index
    %c0_8 = arith.constant 0 : index
    %c0_9 = arith.constant 0 : index
    %c0_10 = arith.constant 0 : index
    %15 = vector.load %arg4[%c0_7, %c0_8, %c0_9, %c0_10] : memref<1x1x1x1024xf32, #tpu.memory_space<vmem>>, vector<1x1x1x1024xf32>
    %16 = vector.shape_cast %15 : vector<1x1x1x1024xf32> to vector<1x1024xf32>
    %cst_11 = arith.constant 0.000000e+00 : f32
    %cst_12 = arith.constant 1.000000e+00 : f32
    %17 = vector.broadcast %cst_11 : f32 to vector<1x1024xf32>
    %18 = arith.maximumf %17, %16 : vector<1x1024xf32>
    %19 = vector.broadcast %cst_12 : f32 to vector<1x1024xf32>
    %20 = arith.minimumf %19, %18 : vector<1x1024xf32>
    %21 = vector.broadcast %14 : vector<1x1024xf32> to vector<32x1024xf32>
    %22 = vector.broadcast %8 : vector<32x1xf32> to vector<32x1024xf32>
    %23 = arith.subf %21, %22 : vector<32x1024xf32>
    %24 = arith.mulf %23, %23 : vector<32x1024xf32>
    %cst_13 = arith.constant -4.805000e+02 : f32
    %25 = vector.broadcast %cst_13 : f32 to vector<32x1024xf32>
    %26 = arith.mulf %25, %24 : vector<32x1024xf32>
    %27 = math.exp %26 : vector<32x1024xf32>
    %cst_14 = arith.constant dense<0.000000e+00> : vector<1024xf32>
    %28 = vector.multi_reduction <add>, %27, %cst_14 [0] : vector<32x1024xf32> to vector<1024xf32>
    %29 = vector.shape_cast %28 : vector<1024xf32> to vector<1x1024xf32>
    %cst_15 = arith.constant 1.000000e+00 : f32
    %30 = vector.broadcast %cst_15 : f32 to vector<1x1024xf32>
    %31 = arith.divf %30, %29 : vector<1x1024xf32>
    %32 = vector.broadcast %31 : vector<1x1024xf32> to vector<32x1024xf32>
    %33 = arith.mulf %27, %32 : vector<32x1024xf32>
    %34 = vector.broadcast %20 : vector<1x1024xf32> to vector<32x1024xf32>
    %35 = vector.broadcast %8 : vector<32x1xf32> to vector<32x1024xf32>
    %36 = arith.subf %34, %35 : vector<32x1024xf32>
    %37 = arith.mulf %36, %36 : vector<32x1024xf32>
    %cst_16 = arith.constant -4.805000e+02 : f32
    %38 = vector.broadcast %cst_16 : f32 to vector<32x1024xf32>
    %39 = arith.mulf %38, %37 : vector<32x1024xf32>
    %40 = math.exp %39 : vector<32x1024xf32>
    %cst_17 = arith.constant dense<0.000000e+00> : vector<1024xf32>
    %41 = vector.multi_reduction <add>, %40, %cst_17 [0] : vector<32x1024xf32> to vector<1024xf32>
    %42 = vector.shape_cast %41 : vector<1024xf32> to vector<1x1024xf32>
    %cst_18 = arith.constant 1.000000e+00 : f32
    %43 = vector.broadcast %cst_18 : f32 to vector<1x1024xf32>
    %44 = arith.divf %43, %42 : vector<1x1024xf32>
    %45 = vector.broadcast %44 : vector<1x1024xf32> to vector<32x1024xf32>
    %46 = arith.mulf %40, %45 : vector<32x1024xf32>
    %c0_19 = arith.constant 0 : index
    %c0_20 = arith.constant 0 : index
    %c0_21 = arith.constant 0 : index
    %c0_22 = arith.constant 0 : index
    %47 = vector.load %arg5[%c0_19, %c0_20, %c0_21, %c0_22] : memref<1x1x32x32xf32, #tpu.memory_space<vmem>>, vector<1x1x32x32xf32>
    %48 = vector.shape_cast %47 : vector<1x1x32x32xf32> to vector<32x32xf32>
    %cst_23 = arith.constant dense<0.000000e+00> : vector<32x32xf32>
    %49 = tpu.matmul %33, %46, %cst_23 {dimension_numbers = #tpu.dot_dimension_numbers<[1], [1], [0], [0], [0, 0, 1, 0], [], []>, precision = #tpu.contract_precision<fp32>} : vector<32x1024xf32>, vector<32x1024xf32>, vector<32x32xf32> -> vector<32x32xf32>
    %50 = arith.addf %48, %49 : vector<32x32xf32>
    %c0_24 = arith.constant 0 : index
    %c0_25 = arith.constant 0 : index
    %c0_26 = arith.constant 0 : index
    %c0_27 = arith.constant 0 : index
    %51 = vector.load %arg5[%c0_24, %c0_25, %c0_26, %c0_27] : memref<1x1x32x32xf32, #tpu.memory_space<vmem>>, vector<1x1x32x32xf32>
    %52 = vector.shape_cast %51 : vector<1x1x32x32xf32> to vector<32x32xf32>
    %53 = vector.shape_cast %50 : vector<32x32xf32> to vector<1x1x32x32xf32>
    tpu.vector_store %arg5[%c0_24, %c0_25, %c0_26, %c0_27], %53 {strides = array<i32>} : memref<1x1x32x32xf32, #tpu.memory_space<vmem>>, vector<1x1x32x32xf32>,
    return
  }
  func.func @transform_0(%arg0: i32, %arg1: i32, %arg2: i32) -> (i32, i32, i32, i32) {
    %c1_i32 = arith.constant 1 : i32
    %0 = arith.muli %arg1, %c1_i32 : i32
    %1 = arith.addi %0, %arg2 : i32
    %c0_i32 = arith.constant 0 : i32
    %c0_i32_0 = arith.constant 0 : i32
    %c0_i32_1 = arith.constant 0 : i32
    return %arg0, %1, %c0_i32, %c0_i32_0 : i32, i32, i32, i32
  }
  func.func @transform_1(%arg0: i32, %arg1: i32, %arg2: i32) -> (i32, i32, i32, i32) {
    %c1_i32 = arith.constant 1 : i32
    %0 = arith.muli %arg1, %c1_i32 : i32
    %1 = arith.addi %0, %arg2 : i32
    %c0_i32 = arith.constant 0 : i32
    %c0_i32_0 = arith.constant 0 : i32
    %c0_i32_1 = arith.constant 0 : i32
    return %arg0, %1, %c0_i32, %c0_i32_0 : i32, i32, i32, i32
  }
  func.func @transform_2(%arg0: i32, %arg1: i32, %arg2: i32) -> (i32, i32, i32, i32) {
    %c0_i32 = arith.constant 0 : i32
    %c0_i32_0 = arith.constant 0 : i32
    %c0_i32_1 = arith.constant 0 : i32
    return %arg0, %arg1, %c0_i32, %c0_i32_0 : i32, i32, i32, i32
  }
}

</mosaic_0001>

<bundles_post_ra>
// kernel: tpu_custom_call.1
= control target key start
LH: loop header
LB: loop body
LE: loop exit
PB: predicated region body
PF: predicated region fallthrough
CT: control target
= control target key end

     0   :  { %7 = vsyncpa [#allocation3], 0  ;;  %s6156_s0 = inlined_call_operand.hbm [shape: f32[2,1,1,1024], index: 0, kind: input, shape index: {}]   ;;  %s6157_s1 = inlined_call_operand.hbm [shape: f32[2,1,1,1024], index: 1, kind: input, shape index: {}]   ;;  %s6158_s2 = inlined_call_operand.hbm [shape: f32[2,1,32,32], index: 2, kind: output, shape index: {}]  }
   0x1   :  { %9 = vsyncpa [#allocation3 + $0x1], 0 }
   0x2   :  { %10 = vsyncpa [#allocation6], 0 }
   0x3   :  { %12 = vsyncpa [#allocation6 + $0x1], 0 }
   0x4   :  { %13 = vsyncpa [#allocation4], 0 }
   0x5   :  { %15 = vsyncpa [#allocation4 + $0x1], 0  ;;  %s4541_s9 = smov 0   ;;  %s4543_s10 = smov 0  }
   0x6   :  { %s4545_s11 = smov 0   ;;  %s4547_s12 = smov 0  }
   0x7   :  { %s4549_s13 = smov 0   ;;  %s4551_s14 = smov 0  }
   0x8 LB: > { %s3928_s15 = sadd.s32 4294967295, %s4518_s14   ;;  %s3929_s16 = sadd.s32 4294967294, %s4518_s14   ;;  %s4518_s14 = sphi %s4551_s14, %s21_s14   ;;  %s4514_s13 = sphi %s4549_s13, %s6305_s13   ;;  %s4510_s12 = sphi %s4547_s12, %s6304_s12   ;;  %s4506_s11 = sphi %s4545_s11, %s6303_s11   ;;  %s4502_s10 = sphi %s4543_s10, %s6302_s10   ;;  %s4498_s9 = sphi %s4541_s9, %s6301_s9  }
   0x9   : > { %s40_s17 = sadd.s32 1, %s4514_s13  ;;  %s51_s18 = sadd.s32 1, %s4506_s11 }
   0xa   : > { %p42_p0 = scmp.ge.s32.totalorder %s40_s17, 2  ;;  %p58_p1 = scmp.ne.s32.totalorder %s4506_s11, %s4502_s10 }
   0xb   : > { %p59_p2 = scmp.eq.s32.totalorder %s4518_s14, 0  ;;  %p64_p3 = scmp.ne.s32.totalorder %s4502_s10, %s4498_s9 }
   0xc   : > { %s6307_s17 = smov (%p42_p0, %s40_s17), 0  ;;  %p65_p5 = scmp.eq.s32.totalorder %s3928_s15, 0 }
   0xd   : > { %p4582_p4 = por %p59_p2, %p58_p1  ;;  %s46_s20 = ssub.s32 %s4514_s13, %s6307_s17 }
   0xe   : > { %p120_p6 = scmp.eq.s32.totalorder %s3928_s15, 1  ;;  %p49_p7 = scmp.eq.s32.totalorder %s46_s20, 0 }
   0xf   : > { %p4588_p8 = por %p65_p5, %p64_p3  ;;  %p126_p10 = scmp.eq.s32.totalorder %s3929_s16, 1 }
  0x10   : > { %p4592_p9 = por %p120_p6, %p58_p1  ;;  %p4159_p13 = scmp.lt.s32.totalorder %s4518_s14, 2 }
  0x11   : > { %s6219_s21 = scalar_select %p4588_p8, 1, 0 }
  0x12   : > { %s6220_s22 = scalar_select %p4592_p9, 1, 0 }
  0x13   : > { %s4597_s23 = scalar_select %p49_p7, %s4506_s11, %s51_s18  }
  0x14   : > { %p4599_p11 = por %p126_p10, %p64_p3  ;;  %s4606_s25 = sand.u32 1, %s4506_s11  }
  0x15   : > { %s3932_s26 = sshll.u32 %s4606_s25, 3  ;;  %s3947_s27 = sshll.u32 %s4514_s13, 7 }
  0x16   : > { %s6221_s24 = scalar_select %p4599_p11, 1, 0 }
  0x17   : > { %s4615_s30 = scalar_lea.hbm %s6156_s0, %s3947_s27  ;;  %s150_s3 = scalar_lea.vmem [#allocation2], %s3932_s26 }
  0x18   : > { %s161_s4 = sshll.u32 %s150_s3, 4  ;;  %p4623_p0 = pnand %p4159_p13, %p4582_p4  ;;  %s4619_s4 = int_to_ptr.vmem [resolvable:$true] %s161_s4 }
  0x19   : > { %s147_s6 = scalar_lea.sflag [#allocation3], %s4606_s25  ;;  %s4372_s7 = scalar_lea.hbm %s4615_s30, 128 }
  0x1a   : > { %p4373_p3 = scmp.ne.s32.totalorder %s4615_s30, %s4372_s7  ;;  %p4374_p5 = pneg %p4623_p0 }
  0x1b   : > { %s4377_s16 = scalar_lea.hbm %s6156_s0, 256  ;;  %p4378_p4 = scmp.lt.u32.totalorder %s4615_s30, %s6156_s0 }
  0x1c   : > { %p4375_p6 = pnand %p4374_p5, %p4373_p3  ;;  %p4379_p10 = scmp.lt.u32.totalorder %s4377_s16, %s4372_s7 }
  0x1d   : > { %p4381_p12 = scmp.lt.u32.totalorder %s4372_s7, %s4615_s30 }
  0x1e   : > { %p4376_p7 = pneg %p4375_p6  ;;  %p4380_p13 = por %p4379_p10, %p4378_p4 }
  0x20   : > { %p4382_p1 = por %p4381_p12, %p4380_p13 }
  0x22   : > { %p4383_p2 = pnand %p4382_p1, %p4376_p7 }
  0x24   : > { %4386 = shalt.err (!%p4383_p2)
}
  0x25   : > { %s4387_s20 = scalar_lea.vmem %s4619_s4, 128  ;;  %s4520_s28 = smov [#allocation2]  }
  0x26   : > { %p4388_p3 = scmp.ne.s32.totalorder %s4619_s4, %s4387_s20  ;;  %s4392_s29 = sshll.u32 %s4520_s28, 4  ;;  %s4393_s29 = int_to_ptr.vmem [resolvable:$false] %s4392_s29 }
  0x27   : > { %s4394_s3 = scalar_lea.vmem %s4393_s29, 256  ;;  %p4395_p9 = scmp.lt.s32.totalorder %s4619_s4, %s4393_s29 }
  0x28   : > { %p4390_p6 = pnand %p4388_p3, %p4374_p5  ;;  %p4396_p4 = scmp.lt.s32.totalorder %s4394_s3, %s4387_s20 }
  0x2a   : > { %p4391_p11 = pneg %p4390_p6  ;;  %p4397_p10 = por %p4396_p4, %p4395_p9 }
  0x2c   : > { %p4398_p12 = pnand %p4397_p10, %p4391_p11 }
  0x2e   : > { %4401 = shalt.err (!%p4398_p12)
}
  0x2f   : > { %4151 = dma.hbm_to_vmem [thread:$0]  (!%p4623_p0), %s4615_s30, 128, %s4619_s4, %s147_s6  }
  0x30   : > { %p6223_p1 = scmp.lt.s32.totalorder %s4518_s14, 3  ;;  %p6224_p2 = scmp.ge.s32.totalorder %s4518_s14, 1 }
  0x31   : > { %s4668_s16 = scalar_lea.hbm %s6157_s1, %s3947_s27  ;;  %s172_s18 = scalar_lea.vmem [#allocation5], %s3932_s26 }
  0x32   : > { %p4659_p7 = pnand %p6224_p2, %p6223_p1  ;;  %s183_s19 = sshll.u32 %s172_s18, 4  ;;  %s184_s19 = int_to_ptr.vmem [resolvable:$true] %s183_s19 }
  0x33   : > { %s169_s30 = scalar_lea.sflag [#allocation6], %s4606_s25  ;;  %s4402_s4 = scalar_lea.hbm %s4668_s16, 128 }
  0x34   : > { %s6225_s7 = scalar_select %p4659_p7, 1, 0 }
  0x35   : > { %p4403_p9 = scmp.ne.s32.totalorder %s4668_s16, %s4402_s4  ;;  %s4407_s27 = scalar_lea.hbm %s6157_s1, 256 }
  0x36   : > { %p4408_p3 = scmp.lt.u32.totalorder %s4668_s16, %s6157_s1  ;;  %p4409_p6 = scmp.lt.u32.totalorder %s4407_s27, %s4402_s4 }
  0x37   : > { %p4405_p11 = pnand %p4403_p9, %p4374_p5  ;;  %p4411_p10 = scmp.lt.u32.totalorder %s4402_s4, %s4668_s16 }
  0x38   : > { %p4410_p4 = por %p4409_p6, %p4408_p3 }
  0x39   : > { %p4406_p13 = pneg %p4405_p11 }
  0x3a   : > { %p4412_p12 = por %p4411_p10, %p4410_p4 }
  0x3c   : > { %p4413_p1 = pnand %p4412_p12, %p4406_p13 }
  0x3e   : > { %4416 = shalt.err (!%p4413_p1)
}
  0x3f   : > { %s4417_s25 = scalar_lea.vmem %s184_s19, 128  ;;  %s4521_s26 = smov [#allocation5]  }
  0x40   : > { %p4418_p2 = scmp.ne.s32.totalorder %s184_s19, %s4417_s25  ;;  %s4422_s3 = sshll.u32 %s4521_s26, 4  ;;  %s4423_s3 = int_to_ptr.vmem [resolvable:$false] %s4422_s3 }
  0x41   : > { %s4424_s8 = scalar_lea.vmem %s4423_s3, 256  ;;  %p4425_p8 = scmp.lt.s32.totalorder %s184_s19, %s4423_s3 }
  0x42   : > { %p4420_p9 = pnand %p4418_p2, %p4374_p5  ;;  %p4426_p7 = scmp.lt.s32.totalorder %s4424_s8, %s4417_s25 }
  0x44   : > { %p4421_p11 = pneg %p4420_p9  ;;  %p4427_p3 = por %p4426_p7, %p4425_p8 }
  0x46   : > { %p4428_p6 = pnand %p4427_p3, %p4421_p11 }
  0x48   : > { %4431 = shalt.err (!%p4428_p6)
}
  0x49   : > { %4154 = dma.hbm_to_vmem [thread:$0]  (!%p4623_p0), %s4668_s16, 128, %s184_s19, %s169_s30  }
  0x4a   : > { %p6226_p13 = scmp.ne.s32.totalorder %s6225_s7, 0 }
  0x4c   : > { %192 = sbr.rel (%p6226_p13) target bundleno = 642 (0x282), region = 28 }
  0x53   : > { %s4695_s15 = sand.u32 1, %s4502_s10   ;;  %p6227_p5 = scmp.ne.s32.totalorder %s6219_s21, 0 }
  0x54   : > { %s3939_s18 = sshll.u32 %s4695_s15, 3  ;;  %s195_s4 = scalar_lea.sflag [#allocation3], %s4695_s15 }
  0x55   : > { %s198_s6 = scalar_lea.vmem [#allocation2], %s3939_s18 }
  0x56   : > { %4485 = dma.done.wait (%p6227_p5), %s195_s4, 128  }
  0x57   : > { %4487 = vsyncadd (%p6227_p5), %s195_s4, 4294967168  ;;  %s204_s5 = scalar_lea.sflag [#allocation6], %s4695_s15  ;;  %s207_s16 = scalar_lea.vmem [#allocation5], %s3939_s18 }
  0x58   : > { %4489 = dma.done.wait (%p6227_p5), %s204_s5, 128  }
  0x59   : > { %4491 = vsyncadd (%p6227_p5), %s204_s5, 4294967168  ;;  %v244_v0 = vlaneseq  ;;  %v264_v9 = vld [vmem:[%s207_s16] sm:$0xff]  ;;  %v261_v10 = vld [vmem:[%s198_s6] sm:$0xff]  ;;  %s3941_s21 = sshll.u32 %s4695_s15, 5  ;;  %vm239_vm0 = vcmask 261120   ;;  %s3949_s19 = sshll.u32 %s4510_s12, 9 }
  0x5a   : > { %v265_v11 = vmax.f32 %v264_v9, 0.0  ;;  %v262_v14 = vmax.f32 %v261_v10, 0.0  ;;  %s6078_s7 = scalar_lea.vmem [#allocation7], %s3941_s21  ;;  %s6103_s28 = scalar_lea.hbm %s6158_s2, %s3949_s19 }
  0x5b   : > { %v4708_v1 = vshrl.u32 %v244_v0, 7  ;;  %s3810_s30 = sshll.u32 %s6078_s7, 4  ;;  %s3795_s29 = scalar_lea.sflag [#allocation4], %s4695_s15  ;;  %s6105_s30 = int_to_ptr.vmem [resolvable:$true] %s3810_s30 }
  0x5c   : > { %v4725_v20 = vmin.f32 %v265_v11, 1.0  ;;  %v4727_v21 = vmin.f32 %v262_v14, 1.0  ;;  %s4432_s12 = scalar_lea.vmem %s6105_s30, 512  ;;  %p6298_p0 = scmp.ne.s32.totalorder %s6220_s22, 0 }
  0x5d   : > { %v246_v2 = vadd.s32 8, %v4708_v1  ;;  %v247_v3 = vadd.s32 16, %v4708_v1  ;;  %v248_v4 = vadd.s32 24, %v4708_v1  ;;  %v249_v5 = vcvt.s32.f32 %v4708_v1  ;;  %p4433_p8 = scmp.ne.s32.totalorder %s6105_s30, %s4432_s12  ;;  %s4523_s25 = smov [#allocation7]  }
  0x5e   : > { %v274_v12 = vsub.s32 1, %v4708_v1  ;;  %v270_v13 = vsub.s32 0, %v4708_v1  ;;  %v282_v17 = vsub.s32 3, %v4708_v1  ;;  %6228 = vst [vmem:[#allocation11_spill] sm:$0xff] %v4725_v20  ;;  %6229 = vst [vmem:[#allocation12_spill] sm:$0xff] %v4727_v21  ;;  %v278_v22 = vsub.s32 2, %v4708_v1 }
  0x5f   : > { %v250_v6 = vcvt.s32.f32 %v246_v2  ;;  %v251_v7 = vcvt.s32.f32 %v247_v3  ;;  %v252_v8 = vcvt.s32.f32 %v248_v4  ;;  %v4716_v15 = vmul.f32 0.032258064, %v249_v5  ;;  %p4434_p7 = pnand %p4433_p8, %p6298_p0  ;;  %s4436_s26 = sshll.u32 %s4523_s25, 4  ;;  %s4437_s26 = int_to_ptr.vmem [resolvable:$false] %s4436_s26 }
  0x60   : > { %v596_v23 = vrot.slane %v4725_v20, %v274_v12  ;;  %v592_v24 = vrot.slane %v4725_v20, %v270_v13  ;;  %v275_v25 = vrot.slane %v4727_v21, %v274_v12  ;;  %v271_v26 = vrot.slane %v4727_v21, %v270_v13  ;;  %s4438_s3 = scalar_lea.vmem %s4437_s26, 1024  ;;  %p4439_p10 = scmp.lt.s32.totalorder %s6105_s30, %s4437_s26 }
  0x61   : > { %v4718_v16 = vmul.f32 0.032258064, %v250_v6  ;;  %v4721_v18 = vmul.f32 0.032258064, %v251_v7  ;;  %v4723_v19 = vmul.f32 0.032258064, %v252_v8  ;;  %v4737_v27 = vrot.slane %v4725_v20, %v282_v17  ;;  %p4435_p4 = pneg %p4434_p7  ;;  %p4440_p12 = scmp.lt.s32.totalorder %s4438_s3, %s4432_s12 }
  0x62   : > { %v4742_v28 = vrot.slane %v4727_v21, %v278_v22  ;;  %v630_v29 = vsub.f32 %v596_v23, %v4716_v15  ;;  %v629_v33 = vsub.f32 %v592_v24, %v4716_v15  ;;  %v309_v56 = vsub.f32 %v275_v25, %v4716_v15 }
  0x63   : > { %v638_v30 = vsub.f32 %v596_v23, %v4718_v16  ;;  %v646_v31 = vsub.f32 %v596_v23, %v4721_v18  ;;  %v654_v32 = vsub.f32 %v596_v23, %v4723_v19  ;;  %v637_v34 = vsub.f32 %v592_v24, %v4718_v16  ;;  %p4441_p1 = por %p4440_p12, %p4439_p10 }
  0x64   : > { %v645_v35 = vsub.f32 %v592_v24, %v4721_v18  ;;  %v653_v36 = vsub.f32 %v592_v24, %v4723_v19  ;;  %v662_v37 = vmul.f32 %v630_v29, %v630_v29  ;;  %v661_v41 = vmul.f32 %v629_v33, %v629_v33 }
  0x65   : > { %v670_v38 = vmul.f32 %v638_v30, %v638_v30  ;;  %v678_v39 = vmul.f32 %v646_v31, %v646_v31  ;;  %v686_v40 = vmul.f32 %v654_v32, %v654_v32  ;;  %v669_v42 = vmul.f32 %v637_v34, %v637_v34  ;;  %p4442_p2 = pnand %p4441_p1, %p4435_p4 }
  0x66   : > { %v677_v43 = vmul.f32 %v645_v35, %v645_v35  ;;  %v685_v44 = vmul.f32 %v653_v36, %v653_v36  ;;  %v694_v45 = vmul.f32 -480.5, %v662_v37  ;;  %v693_v49 = vmul.f32 -480.5, %v661_v41 }
  0x67   : > { %v702_v46 = vmul.f32 -480.5, %v670_v38  ;;  %v710_v47 = vmul.f32 -480.5, %v678_v39  ;;  %v718_v48 = vmul.f32 -480.5, %v686_v40  ;;  %v701_v50 = vmul.f32 -480.5, %v669_v42 }
  0x68   : > { %v709_v51 = vmul.f32 -480.5, %v677_v43  ;;  %v717_v52 = vmul.f32 -480.5, %v685_v44  ;;  %v727_v53 = vmul.f32 1.442695, %v694_v45  ;;  %v725_v58 = vmul.f32 1.442695, %v693_v49 }
  0x69   : > { %v743_v54 = vmul.f32 1.442695, %v702_v46  ;;  %v759_v55 = vmul.f32 1.442695, %v710_v47  ;;  %v775_v57 = vmul.f32 1.442695, %v718_v48  ;;  %v317_v60 = vsub.f32 %v275_v25, %v4718_v16 }
  0x6a   : > { %v741_v59 = vmul.f32 1.442695, %v701_v50  ;;  %4212 = vpow2.f32 %v727_v53  ;;  %v757_v61 = vmul.f32 1.442695, %v709_v51  ;;  %v773_v62 = vmul.f32 1.442695, %v717_v52 }
  0x6b   : > { %v325_v63 = vsub.f32 %v275_v25, %v4721_v18  ;;  %4214 = vpow2.f32 %v743_v54  ;;  %v333_v0 = vsub.f32 %v275_v25, %v4723_v19  ;;  %v341_v2 = vmul.f32 %v309_v56, %v309_v56 }
  0x6c   : > { %v349_v3 = vmul.f32 %v317_v60, %v317_v60  ;;  %4216 = vpow2.f32 %v759_v55  ;;  %v308_v5 = vsub.f32 %v271_v26, %v4716_v15  ;;  %v316_v6 = vsub.f32 %v271_v26, %v4718_v16 }
  0x6d   : > { %v357_v4 = vmul.f32 %v325_v63, %v325_v63  ;;  %4218 = vpow2.f32 %v775_v57  ;;  %v365_v7 = vmul.f32 %v333_v0, %v333_v0  ;;  %v373_v8 = vmul.f32 -480.5, %v341_v2 }
  0x6e   : > { %v381_v9 = vmul.f32 -480.5, %v349_v3  ;;  %4220 = vpow2.f32 %v725_v58  ;;  %v324_v11 = vsub.f32 %v271_v26, %v4721_v18  ;;  %v332_v12 = vsub.f32 %v271_v26, %v4723_v19 }
  0x6f   : > { %v389_v10 = vmul.f32 -480.5, %v357_v4  ;;  %4222 = vpow2.f32 %v741_v59  ;;  %v397_v13 = vmul.f32 -480.5, %v365_v7  ;;  %v406_v14 = vmul.f32 1.442695, %v373_v8 }
  0x70   : > { %v422_v23 = vmul.f32 1.442695, %v381_v9  ;;  %4224 = vpow2.f32 %v757_v61  ;;  %v340_v25 = vmul.f32 %v308_v5, %v308_v5  ;;  %v348_v29 = vmul.f32 %v316_v6, %v316_v6 }
  0x71   : > { %v438_v24 = vmul.f32 1.442695, %v389_v10  ;;  %4226 = vpow2.f32 %v773_v62  ;;  %v454_v30 = vmul.f32 1.442695, %v397_v13  ;;  %v356_v31 = vmul.f32 %v324_v11, %v324_v11 }
  0x72   : > { %v364_v32 = vmul.f32 %v332_v12, %v332_v12  ;;  %4228 = vpow2.f32 %v406_v14  ;;  %v372_v33 = vmul.f32 -480.5, %v340_v25  ;;  %v380_v34 = vmul.f32 -480.5, %v348_v29 }
  0x73   : > { %v632_v35 = vsub.f32 %v4737_v27, %v4716_v15  ;;  %4230 = vpow2.f32 %v422_v23  ;;  %v388_v26 = vmul.f32 -480.5, %v356_v31  ;;  %v640_v37 = vsub.f32 %v4737_v27, %v4718_v16 }
  0x74   : > { %v396_v36 = vmul.f32 -480.5, %v364_v32  ;;  %v4764_v38 = vpop.eup %4212  ;;  %4232 = vpow2.f32 %v438_v24  ;;  %v404_v39 = vmul.f32 1.442695, %v372_v33  ;;  %v420_v40 = vmul.f32 1.442695, %v380_v34 }
  0x75   : > { %v648_v41 = vsub.f32 %v4737_v27, %v4721_v18  ;;  %v4768_v42 = vpop.eup %4214  ;;  %4234 = vpow2.f32 %v454_v30  ;;  %v436_v43 = vmul.f32 1.442695, %v388_v26  ;;  %v656_v45 = vsub.f32 %v4737_v27, %v4723_v19 }
  0x76   : > { %v452_v44 = vmul.f32 1.442695, %v396_v36  ;;  %v4772_v46 = vpop.eup %4216  ;;  %v798_v47 = vadd.f32 %v4768_v42, %v4764_v38  ;;  %4236 = vpow2.f32 %v404_v39  ;;  %v664_v48 = vmul.f32 %v632_v35, %v632_v35 }
  0x77   : > { %v672_v49 = vmul.f32 %v640_v37, %v640_v37  ;;  %v4776_v50 = vpop.eup %4218  ;;  %4238 = vpow2.f32 %v420_v40  ;;  %v680_v51 = vmul.f32 %v648_v41, %v648_v41  ;;  %v688_v52 = vmul.f32 %v656_v45, %v656_v45 }
  0x78   : > { %v318_v53 = vsub.f32 %v4742_v28, %v4718_v16  ;;  %v4780_v54 = vpop.eup %4220  ;;  %v799_v27 = vadd.f32 %v4772_v46, %v798_v47  ;;  %4240 = vpow2.f32 %v436_v43  ;;  %v696_v55 = vmul.f32 -480.5, %v664_v48 }
  0x79   : > { %v704_v56 = vmul.f32 -480.5, %v672_v49  ;;  %v4783_v57 = vpop.eup %4222  ;;  %4242 = vpow2.f32 %v452_v44  ;;  %v712_v58 = vmul.f32 -480.5, %v680_v51  ;;  %v720_v59 = vmul.f32 -480.5, %v688_v52 }
  0x7a   : > { %v326_v60 = vsub.f32 %v4742_v28, %v4721_v18  ;;  %v4787_v61 = vpop.eup %4224  ;;  %v800_v62 = vadd.f32 %v4776_v50, %v799_v27  ;;  %v789_v63 = vadd.f32 %v4783_v57, %v4780_v54  ;;  %v731_v0 = vmul.f32 1.442695, %v696_v55 }
  0x7b   : > { %v747_v2 = vmul.f32 1.442695, %v704_v56  ;;  %v4792_v3 = vpop.eup %4226  ;;  %v763_v4 = vmul.f32 1.442695, %v712_v58  ;;  %v779_v5 = vmul.f32 1.442695, %v720_v59  ;;  %v350_v6 = vmul.f32 %v318_v53, %v318_v53 }
  0x7c   : > { %v600_v7 = vrot.slane %v4725_v20, %v278_v22  ;;  %v4797_v8 = vpop.eup %4228  ;;  %v801_v9 = vrot.slane %v800_v62, 4  ;;  %v790_v10 = vadd.f32 %v4787_v61, %v789_v63  ;;  %4244 = vpow2.f32 %v731_v0 }
  0x7d   : > { %v358_v11 = vmul.f32 %v326_v60, %v326_v60  ;;  %v4800_v12 = vpop.eup %4230  ;;  %4246 = vpow2.f32 %v747_v2  ;;  %v334_v13 = vsub.f32 %v4742_v28, %v4723_v19  ;;  %v382_v14 = vmul.f32 -480.5, %v350_v6 }
  0x7e   : > { %v6161_v23 = vsub.s32 5, %v4708_v1  ;;  %v4805_v24 = vpop.eup %4232  ;;  %v802_v25 = vadd.f32 %v801_v9, %v800_v62  ;;  %v791_v22 = vadd.f32 %v4792_v3, %v790_v10  ;;  %v477_v29 = vadd.f32 %v4800_v12, %v4797_v8 }
  0x7f   : > { %4248 = vpow2.f32 %v763_v4  ;;  %v4810_v30 = vpop.eup %4234  ;;  %v390_v31 = vmul.f32 -480.5, %v358_v11  ;;  %v424_v32 = vmul.f32 1.442695, %v382_v14  ;;  %v631_v33 = vsub.f32 %v600_v7, %v4716_v15 }
  0x80   : > { %4250 = vpow2.f32 %v779_v5  ;;  %v4813_v34 = vpop.eup %4236  ;;  %v803_v35 = vrot.slane %v802_v25, 2  ;;  %v792_v26 = vrot.slane %v791_v22, 4  ;;  %v478_v36 = vadd.f32 %v4805_v24, %v477_v29 }
  0x81   : > { %v639_v37 = vsub.f32 %v600_v7, %v4718_v16  ;;  %v4817_v39 = vpop.eup %4238  ;;  %v366_v40 = vmul.f32 %v334_v13, %v334_v13  ;;  %v440_v41 = vmul.f32 1.442695, %v390_v31  ;;  %v647_v43 = vsub.f32 %v600_v7, %v4721_v18 }
  0x82   : > { %v283_v44 = vrot.slane %v4727_v21, %v282_v17  ;;  %v4823_v45 = vpop.eup %4240  ;;  %v804_v47 = vadd.f32 %v803_v35, %v802_v25  ;;  %v793_v48 = vadd.f32 %v792_v26, %v791_v22  ;;  %v479_v49 = vadd.f32 %v4810_v30, %v478_v36 }
  0x83   : > { %v468_v51 = vadd.f32 %v4817_v39, %v4813_v34  ;;  %v4828_v52 = vpop.eup %4242  ;;  %4252 = vpow2.f32 %v424_v32  ;;  %v655_v53 = vsub.f32 %v600_v7, %v4723_v19  ;;  %v663_v27 = vmul.f32 %v631_v33, %v631_v33 }
  0x84   : > { %v671_v55 = vmul.f32 %v639_v37, %v639_v37  ;;  %v805_v56 = vrot.slane %v804_v47, 1  ;;  %v794_v58 = vrot.slane %v793_v48, 2  ;;  %v480_v59 = vrot.slane %v479_v49, 4 }
  0x85   : > { %v469_v17 = vadd.f32 %v4823_v45, %v468_v51  ;;  %4254 = vpow2.f32 %v440_v41  ;;  %v679_v60 = vmul.f32 %v647_v43, %v647_v43  ;;  %v687_v62 = vmul.f32 %v655_v53, %v655_v53 }
  0x86   : > { %v695_v63 = vmul.f32 -480.5, %v663_v27  ;;  %v4832_v0 = vpop.eup %4244  ;;  %v806_v2 = vadd.f32 %v805_v56, %v804_v47  ;;  %v795_v4 = vadd.f32 %v794_v58, %v793_v48  ;;  %v481_v5 = vadd.f32 %v480_v59, %v479_v49 }
  0x87   : > { %v470_v6 = vadd.f32 %v4828_v52, %v469_v17  ;;  %v4835_v9 = vpop.eup %4246  ;;  %v703_v7 = vmul.f32 -480.5, %v671_v55  ;;  %v711_v10 = vmul.f32 -480.5, %v679_v60  ;;  %v719_v11 = vmul.f32 -480.5, %v687_v62 }
  0x88   : > { %v729_v13 = vmul.f32 1.442695, %v695_v63  ;;  %4256 = vrcp.f32 %v806_v2  ;;  %v796_v25 = vrot.slane %v795_v4, 1  ;;  %v482_v22 = vrot.slane %v481_v5, 2 }
  0x89   : > { %v4837_v14 = vpop.eup %4248  ;;  %v471_v29 = vrot.slane %v470_v6, 4  ;;  %v816_v32 = vadd.f32 %v4835_v9, %v4832_v0  ;;  %v398_v33 = vmul.f32 -480.5, %v366_v40  ;;  %v745_v35 = vmul.f32 1.442695, %v703_v7 }
  0x8a   : > { %v4839_v31 = vpop.eup %4250  ;;  %4258 = vpow2.f32 %v729_v13  ;;  %v797_v26 = vadd.f32 %v796_v25, %v795_v4  ;;  %v483_v36 = vadd.f32 %v482_v22, %v481_v5  ;;  %v761_v41 = vmul.f32 1.442695, %v711_v10 }
  0x8b   : > { %v472_v37 = vadd.f32 %v471_v29, %v470_v6  ;;  %v817_v43 = vadd.f32 %v4837_v14, %v816_v32  ;;  %v777_v47 = vmul.f32 1.442695, %v719_v11  ;;  %v311_v48 = vsub.f32 %v283_v44, %v4716_v15 }
  0x8c   : > { %v319_v49 = vsub.f32 %v283_v44, %v4718_v16  ;;  %4260 = vrcp.f32 %v797_v26  ;;  %v484_v51 = vrot.slane %v483_v36, 1  ;;  %v327_v27 = vsub.f32 %v283_v44, %v4721_v18 }
  0x8d   : > { %v473_v53 = vrot.slane %v472_v37, 2  ;;  %v4847_v55 = vpop.eup %4252  ;;  %v818_v40 = vadd.f32 %v4839_v31, %v817_v43  ;;  %4262 = vpow2.f32 %v745_v35  ;;  %v335_v56 = vsub.f32 %v283_v44, %v4723_v19 }
  0x8e   : > { %v343_v58 = vmul.f32 %v311_v48, %v311_v48  ;;  %v485_v59 = vadd.f32 %v484_v51, %v483_v36  ;;  %4264 = vpow2.f32 %v761_v41  ;;  %v351_v60 = vmul.f32 %v319_v49, %v319_v49 }
  0x8f   : > { %v474_v17 = vadd.f32 %v473_v53, %v472_v37  ;;  %v4851_v62 = vpop.eup %4254  ;;  %v819_v63 = vrot.slane %v818_v40, 4  ;;  %v359_v2 = vmul.f32 %v327_v27, %v327_v27  ;;  %v367_v4 = vmul.f32 %v335_v56, %v335_v56 }
  0x90   : > { %6230 = vst [vmem:[#allocation13_spill] sm:$0xff] %v4851_v62  ;;  %v375_v5 = vmul.f32 -480.5, %v343_v58  ;;  %4266 = vrcp.f32 %v485_v59  ;;  %v383_v7 = vmul.f32 -480.5, %v351_v60  ;;  %v310_v10 = vsub.f32 %v4742_v28, %v4716_v15 }
  0x91   : > { %v475_v6 = vrot.slane %v474_v17, 1  ;;  %v820_v11 = vadd.f32 %v819_v63, %v818_v40  ;;  %v4855_v13 = vmul.f32 1.442695, %v398_v33  ;;  %4268 = vpow2.f32 %v777_v47 }
  0x92   : > { %v4257_v25 = vpop.eup %4256  ;;  %v391_v29 = vmul.f32 -480.5, %v359_v2  ;;  %v399_v32 = vmul.f32 -480.5, %v367_v4  ;;  %v4858_v35 = vmul.f32 1.442695, %v375_v5  ;;  %v4866_v43 = vmul.f32 1.442695, %v383_v7 }
  0x93   : > { %v476_v22 = vadd.f32 %v475_v6, %v474_v17  ;;  %v878_v36 = vmul.f32 %v4257_v25, %v4764_v38  ;;  %v886_v37 = vmul.f32 %v4257_v25, %v4768_v42  ;;  %v894_v28 = vmul.f32 %v4257_v25, %v4772_v46 }
  0x94   : > { %v4860_v26 = vpop.eup %4258  ;;  %v902_v33 = vmul.f32 %v4257_v25, %v4776_v50  ;;  %v821_v41 = vrot.slane %v820_v11, 2  ;;  %v4868_v47 = vmul.f32 %v310_v10, %v310_v10  ;;  %v4872_v38 = vmul.f32 1.442695, %v391_v29 }
  0x95   : > { %6231 = vst [vmem:[#allocation14_spill] sm:$0xff] %v4860_v26  ;;  %4270 = vrcp.f32 %v476_v22  ;;  %v913_v48 = vand.u32 4294901760, %v878_v36  ;;  %v917_v49 = vand.u32 4294901760, %v886_v37  ;;  %v921_v51 = vand.u32 4294901760, %v894_v28 }
  0x96   : > { %v925_v53 = vand.u32 4294901760, %v902_v33  ;;  %v4261_v27 = vpop.eup %4260  ;;  %v4870_v40 = vadd.f32 %v821_v41, %v820_v11  ;;  %v4874_v42 = vmul.f32 1.442695, %v399_v32  ;;  %v4879_v46 = vrot.slane %v4725_v20, %v6161_v23 }
  0x97   : > { %v4881_v50 = vpop.eup %4262  ;;  %v4883_v56 = vpack.c.bf16 %v917_v49, %v913_v48  ;;  %v877_v58 = vmul.f32 %v4261_v27, %v4780_v54  ;;  %v885_v59 = vmul.f32 %v4261_v27, %v4783_v57  ;;  %v4891_v63 = vsub.f32 %v894_v28, %v921_v51 }
  0x98   : > { %6232 = vst [vmem:[#allocation15_spill] sm:$0xff] %v4881_v50  ;;  %v4887_v17 = vpack.c.bf16 %v925_v53, %v921_v51  ;;  %v4889_v60 = vpop.eup %4264  ;;  %v4893_v2 = vsub.f32 %v902_v33, %v925_v53  ;;  %v4895_v4 = vsub.f32 %v878_v36, %v913_v48  ;;  %v4897_v5 = vsub.f32 %v886_v37, %v917_v49 }
  0x99   : > { %3951 = vmatprep.subr.bf16.mxu0 %v4883_v56  ;;  %v915_v6 = vand.u32 4294901760, %v877_v58  ;;  %v919_v7 = vand.u32 4294901760, %v885_v59  ;;  %v893_v54 = vmul.f32 %v4261_v27, %v4787_v61  ;;  %v901_v57 = vmul.f32 %v4261_v27, %v4792_v3 }
  0x9a   : > { %v4902_v10 = vpop.eup %4266  ;;  %v6164_v11 = vand.u32 4294901760, %v4895_v4  ;;  %v6163_v25 = vand.u32 4294901760, %v4897_v5  ;;  %v6162_v22 = vand.u32 4294901760, %v4891_v63  ;;  %v4932_v27 = vadd.f32 %v4881_v50, %v4860_v26 }
  0x9b   : > { %v4908_v32 = vpop.eup %4268  ;;  %v4910_v36 = vpack.c.bf16 %v919_v7, %v915_v6  ;;  %v4912_v37 = vsub.f32 %v877_v58, %v915_v6  ;;  %v4914_v28 = vsub.f32 %v885_v59, %v919_v7  ;;  %v923_v61 = vand.u32 4294901760, %v893_v54 }
  0x9c   : > { %v1049_v3 = vsub.f32 %v4895_v4, %v6164_v11  ;;  %v1061_v33 = vsub.f32 %v4897_v5, %v6163_v25  ;;  %v927_v41 = vand.u32 4294901760, %v901_v57  ;;  %v557_v48 = vmul.f32 %v4902_v10, %v4797_v8 }
  0x9d   : > { %3953 = vmatpush1.bf16.xpose.msra.mxu0 %v4910_v36  ;;  %v6166_v49 = vand.u32 4294901760, %v4912_v37  ;;  %v6168_v51 = vand.u32 4294901760, %v4914_v28  ;;  %v1073_v53 = vsub.f32 %v4891_v63, %v6162_v22  ;;  %v4935_v8 = vsub.f32 %v893_v54, %v923_v61 }
  0x9e   : > { %3955 = vmatprep.subr.bf16.mxu0 %v4887_v17  ;;  %v1050_v59 = vand.u32 4294901760, %v1049_v3  ;;  %v1062_v6 = vand.u32 4294901760, %v1061_v33  ;;  %v4937_v7 = vsub.f32 %v901_v57, %v927_v41  ;;  %v4945_v44 = vand.u32 4294901760, %v557_v48 }
  0x9f   : > { %v4271_v58 = vpop.eup %4270  ;;  %v1055_v23 = vsub.f32 %v4912_v37, %v6166_v49  ;;  %v1067_v22 = vsub.f32 %v4914_v28, %v6168_v51  ;;  %v4948_v29 = vpack.c.bf16 %v927_v41, %v923_v61  ;;  %v1074_v3 = vand.u32 4294901760, %v1073_v53 }
  0xa0   : > { %6233 = vst [vmem:[#allocation16_spill] sm:$0xff] %v4945_v44  ;;  %v556_v25 = vmul.f32 %v4271_v58, %v4813_v34  ;;  %v3958_v11 = vpack.c.bf16 %v1062_v6, %v1050_v59  ;;  %v6234_v54 = vand.u32 4294901760, %v4893_v2  ;;  %v4954_v49 = vsub.f32 %v557_v48, %v4945_v44  ;;  %1151 = vmatprep.mubr.f32.mxu1 %v4945_v44 }
  0xa1   : > { %v1056_v33 = vand.u32 4294901760, %v1055_v23  ;;  %v1068_v50 = vand.u32 4294901760, %v1067_v22  ;;  %v3966_v34 = vpack.c.bf16 %v4897_v5, %v4895_v4  ;;  %v6171_v61 = vand.u32 4294901760, %v4935_v8 }
  0xa2   : > { %v1085_v57 = vsub.f32 %v4893_v2, %v6234_v54  ;;  %v4956_v26 = vand.u32 4294901760, %v556_v25  ;;  %3959 = vmatprep.subr.bf16.mxu1 %v3958_v11  ;;  %v6170_v41 = vand.u32 4294901760, %v4937_v7  ;;  %v6169_v23 = vand.u32 4294901760, %v4954_v49 }
  0xa3   : > { %v3960_v53 = vpack.c.bf16 %v1068_v50, %v1056_v33  ;;  %v565_v48 = vmul.f32 %v4902_v10, %v4800_v12  ;;  %v1079_v11 = vsub.f32 %v4935_v8, %v6171_v61  ;;  %v564_v54 = vmul.f32 %v4271_v58, %v4817_v39 }
  0xa4   : > { %v1086_v51 = vand.u32 4294901760, %v1085_v57  ;;  %v4965_v22 = vsub.f32 %v556_v25, %v4956_v26  ;;  %v1091_v6 = vsub.f32 %v4937_v7, %v6170_v41  ;;  %v988_v50 = vsub.f32 %v4954_v49, %v6169_v23 }
  0xa5   : > { %3957 = vmatpush1.bf16.xpose.msra.mxu0 %v4948_v29  ;;  %3961 = vmatpush1.bf16.xpose.msra.mxu1 %v3960_v53  ;;  %v4981_v25 = vand.u32 4294901760, %v565_v48  ;;  %v4985_v33 = vand.u32 4294901760, %v564_v54  ;;  %v572_v39 = vmul.f32 %v4271_v58, %v4823_v45  ;;  %4272 = vpow2.f32 %v4858_v35 }
  0xa6   : > { %v3962_v59 = vpack.c.bf16 %v1086_v51, %v1074_v3  ;;  %v6174_v12 = vand.u32 4294901760, %v4965_v22  ;;  %v573_v51 = vmul.f32 %v4902_v10, %v4805_v24  ;;  %3967 = vmatprep.subr.bf16.mxu0 %v3966_v34  ;;  %v1080_v3 = vand.u32 4294901760, %v1079_v11 }
  0xa7   : > { %v1092_v57 = vand.u32 4294901760, %v1091_v6  ;;  %v989_v53 = vand.u32 4294901760, %v988_v50  ;;  %v4992_v41 = vsub.f32 %v565_v48, %v4981_v25  ;;  %v3968_v24 = vpack.c.bf16 %v4914_v28, %v4912_v37 }
  0xa8   : > { %3963 = vmatprep.subr.bf16.mxu1 %v3962_v59  ;;  %v994_v23 = vsub.f32 %v4965_v22, %v6174_v12  ;;  %v4994_v61 = vand.u32 4294901760, %v573_v51  ;;  %v4999_v34 = vsub.f32 %v564_v54, %v4985_v33  ;;  %v5001_v59 = vand.u32 4294901760, %v572_v39 }
  0xa9   : > { %v3964_v44 = vpack.c.bf16 %v1092_v57, %v1080_v3  ;;  %990 = vmatprep.mubr.f32.mxu0 %v989_v53  ;;  %v6176_v11 = vand.u32 4294901760, %v4992_v41  ;;  %v3970_v48 = vpack.c.bf16 %v4893_v2, %v4891_v63  ;;  %v581_v54 = vmul.f32 %v4902_v10, %v4810_v30 }
  0xaa   : > { %v995_v45 = vand.u32 4294901760, %v994_v23  ;;  %v5005_v6 = vsub.f32 %v573_v51, %v4994_v61  ;;  %v6175_v50 = vand.u32 4294901760, %v4999_v34  ;;  %v5011_v3 = vsub.f32 %v572_v39, %v5001_v59 }
  0xab   : > { %v580_v57 = vmul.f32 %v4271_v58, %v4828_v52  ;;  %v1003_v23 = vsub.f32 %v4992_v41, %v6176_v11  ;;  %v374_v53 = vmul.f32 -480.5, %v4868_v47  ;;  %v5026_v30 = vand.u32 4294901760, %v581_v54 }
  0xac   : > { %v6181_v51 = vand.u32 4294901760, %v5005_v6  ;;  %996 = vmatmul.mubr.f32.vlgmr.msra.gmra.mrb[0].mxu0 %v995_v45  ;;  %v1009_v39 = vsub.f32 %v4999_v34, %v6175_v50  ;;  %v6180_v12 = vand.u32 4294901760, %v5011_v3  ;;  %v3972_v47 = vpack.c.bf16 %v4937_v7, %v4935_v8 }
  0xad   : > { %v5028_v52 = vand.u32 4294901760, %v580_v57  ;;  %3965 = vmatpush1.bf16.xpose.msra.mxu1 %v3964_v44  ;;  %3969 = vmatpush1.bf16.xpose.msra.mxu0 %v3968_v24  ;;  %v1004_v10 = vand.u32 4294901760, %v1003_v23  ;;  %v6235_v58 = vand.u32 4294901760, %v4895_v4  ;;  %v6236_v45 = vand.u32 4294901760, %v4897_v5 }
  0xae   : > { %v1018_v35 = vsub.f32 %v5005_v6, %v6181_v51  ;;  %v1010_v11 = vand.u32 4294901760, %v1009_v39  ;;  %v1024_v62 = vsub.f32 %v5011_v3, %v6180_v12  ;;  %3971 = vmatprep.subr.bf16.mxu0 %v3970_v48  ;;  %3975 = vmatprep.subr.bf16.mxu1 %v4883_v56  ;;  %v5044_v44 = vsub.f32 %v581_v54, %v5026_v30 }
  0xaf   : > { %v3982_v50 = vpack.c.bf16 %v6236_v45, %v6235_v58  ;;  %v5047_v24 = vsub.f32 %v580_v57, %v5028_v52  ;;  %1005 = vmatprep.mubr.f32.mxu0 %v1004_v10  ;;  %v823_v4 = vrot.slane %v4870_v40, 1  ;;  %v808_v5 = vadd.f32 %v4889_v60, %v4932_v27 }
  0xb0   : > { %v1019_v23 = vand.u32 4294901760, %v1018_v35  ;;  %4274 = vpow2.f32 %v4866_v43  ;;  %1011 = vmatmul.mubr.f32.gmra.mrb[2].mxu0 %v1010_v11  ;;  %v1025_v39 = vand.u32 4294901760, %v1024_v62  ;;  %v6179_v48 = vand.u32 4294901760, %v5044_v44 }
  0xb1   : > { %v6178_v58 = vand.u32 4294901760, %v5047_v24  ;;  %4276 = vpow2.f32 %v4872_v38  ;;  %v824_v54 = vadd.f32 %v823_v4, %v4870_v40  ;;  %v809_v57 = vadd.f32 %v4908_v32, %v808_v5 }
  0xb2   : > { %1020 = vmatprep.mubr.f32.mxu0 %v1019_v23  ;;  %4278 = vpow2.f32 %v4874_v42  ;;  %v408_v10 = vmul.f32 1.442695, %v374_v53  ;;  %v1033_v43 = vsub.f32 %v5044_v44, %v6179_v48  ;;  %v634_v27 = vsub.f32 %v4879_v46, %v4716_v15  ;;  %v5074_v23 = vpop.eup %4272 }
  0xb3   : > { %v1039_v62 = vsub.f32 %v5047_v24, %v6178_v58  ;;  %v642_v38 = vsub.f32 %v4879_v46, %v4718_v16  ;;  %4280 = vrcp.f32 %v824_v54  ;;  %v810_v40 = vrot.slane %v809_v57, 4 }
  0xb4   : > { %v650_v42 = vsub.f32 %v4879_v46, %v4721_v18  ;;  %v658_v11 = vsub.f32 %v4879_v46, %v4723_v19  ;;  %1026 = vmatmul.mubr.f32.gmra.mrb[4].mxu0 %v1025_v39  ;;  %1153 = vmatmul.mubr.f32.vlgmr.msra.gmra.mrb[0].mxu1 %v4956_v26  ;;  %v1034_v53 = vand.u32 4294901760, %v1033_v43  ;;  %4282 = vpow2.f32 %v408_v10 }
  0xb5   : > { %v1040_v35 = vand.u32 4294901760, %v1039_v62  ;;  %v666_v45 = vmul.f32 %v634_v27, %v634_v27  ;;  %3973 = vmatpush1.bf16.xpose.msra.mxu0 %v3972_v47  ;;  %3977 = vmatpush1.bf16.xpose.msra.mxu1 %v4910_v36  ;;  %v811_v4 = vadd.f32 %v810_v40, %v809_v57  ;;  %v674_v5 = vmul.f32 %v642_v38, %v642_v38 }
  0xb6   : > { %v682_v54 = vmul.f32 %v650_v42, %v650_v42  ;;  %1035 = vmatprep.mubr.f32.mxu0 %v1034_v53  ;;  %1158 = vmatprep.mubr.f32.mxu1 %v4981_v25  ;;  %4284 = vpow2.f32 %v4855_v13  ;;  %v690_v46 = vmul.f32 %v658_v11, %v658_v11  ;;  %v6237_v43 = vsub.s32 4, %v4708_v1 }
  0xb7   : > { %v698_v39 = vmul.f32 -480.5, %v666_v45  ;;  %3979 = vmatprep.subr.bf16.mxu1 %v4887_v17  ;;  %3983 = vmatprep.subr.bf16.mxu0 %v3982_v50  ;;  %v812_v47 = vrot.slane %v811_v4, 2  ;;  %v706_v62 = vmul.f32 -480.5, %v674_v5  ;;  %v6238_v57 = vand.u32 4294901760, %v4912_v37 }
  0xb8   : > { %v5082_v10 = vrot.slane %v4727_v21, %v6237_v43  ;;  %1041 = vmatmul.mubr.f32.gmra.mrb[6].mxu0 %v1040_v35  ;;  %1160 = vmatmul.mubr.f32.gmra.mrb[2].mxu1 %v4985_v33  ;;  %v6239_v27 = vand.u32 4294901760, %v4914_v28  ;;  %v714_v38 = vmul.f32 -480.5, %v682_v54  ;;  %v722_v11 = vmul.f32 -480.5, %v690_v46 }
  0xb9   : > { %1165 = vmatprep.mubr.f32.mxu1 %v4994_v61  ;;  %1261 = vmatprep.mubr.f32.mxu0 %v4954_v49  ;;  %v813_v50 = vadd.f32 %v812_v47, %v811_v4  ;;  %v735_v53 = vmul.f32 1.442695, %v698_v39  ;;  %v6240_v28 = vand.u32 4294901760, %v4891_v63  ;;  %v6241_v45 = vand.u32 4294901760, %v4893_v2 }
  0xba   : > { %v3984_v13 = vpack.c.bf16 %v6239_v27, %v6238_v57  ;;  %v320_v40 = vsub.f32 %v5082_v10, %v4718_v16  ;;  %v5092_v42 = vpop.eup %4274  ;;  %v328_v35 = vsub.f32 %v5082_v10, %v4721_v18  ;;  %v6242_v54 = vand.u32 4294901760, %v4935_v8 }
  0xbb   : > { %v5098_v37 = vpop.eup %4276  ;;  %v3986_v5 = vpack.c.bf16 %v6241_v45, %v6240_v28  ;;  %v6243_v43 = vand.u32 4294901760, %v4937_v7  ;;  %v495_v4 = vadd.f32 %v5092_v42, %v5074_v23  ;;  %v751_v46 = vmul.f32 1.442695, %v706_v62 }
  0xbc   : > { %v5110_v39 = vpop.eup %4278  ;;  %v814_v47 = vrot.slane %v813_v50, 1  ;;  %v6244_v27 = vsub.s32 4, %v4708_v1  ;;  %v6245_v63 = vsub.s32 5, %v4708_v1  ;;  %1167 = vmatmul.mubr.f32.gmra.mrb[4].mxu1 %v5001_v59  ;;  %1264 = vmatmul.mubr.f32.vlgmr.msra.gmra.mrb[8].mxu0 %v4965_v22  ;;  %v767_v62 = vmul.f32 1.442695, %v714_v38 }
  0xbd   : > { %v3988_v57 = vpack.c.bf16 %v6243_v43, %v6242_v54  ;;  %v496_v7 = vadd.f32 %v5098_v37, %v495_v4  ;;  %v336_v28 = vsub.f32 %v5082_v10, %v4723_v19  ;;  %v352_v45 = vmul.f32 %v320_v40, %v320_v40  ;;  %v4281_v54 = vpop.eup %4280  ;;  %3981 = vmatpush1.bf16.xpose.msra.mxu1 %v4948_v29 }
  0xbe   : > { %v5115_v58 = vrot.slane %v4725_v20, %v6244_v27  ;;  %v5120_v2 = vrot.slane %v4727_v21, %v6245_v63  ;;  %3985 = vmatpush1.bf16.xpose.msra.mxu0 %v3984_v13  ;;  %v815_v43 = vadd.f32 %v814_v47, %v813_v50  ;;  %4286 = vpow2.f32 %v735_v53  ;;  %v5129_v8 = vpop.eup %4282  ;;  %1172 = vmatprep.mubr.f32.mxu1 %v5026_v30 }
  0xbf   : > { %v783_v27 = vmul.f32 1.442695, %v722_v11  ;;  %v360_v63 = vmul.f32 %v328_v35, %v328_v35  ;;  %1270 = vmatprep.mubr.f32.mxu0 %v4992_v41  ;;  %v880_v38 = vmul.f32 %v4281_v54, %v4832_v0  ;;  %v888_v4 = vmul.f32 %v4281_v54, %v4835_v9  ;;  %3987 = vmatprep.subr.bf16.mxu0 %v3986_v5 }
  0xc0   : > { %v896_v40 = vmul.f32 %v4281_v54, %v4837_v14  ;;  %4288 = vpow2.f32 %v751_v46  ;;  %3991 = vmatprep.subr.bf16.mxu1 %v4883_v56  ;;  %v904_v13 = vmul.f32 %v4281_v54, %v4839_v31  ;;  %v497_v50 = vadd.f32 %v5110_v39, %v496_v7  ;;  %v5141_v53 = vpop.eup %4284  ;;  %1174 = vmatmul.mubr.f32.gmra.mrb[6].mxu1 %v5028_v52  ;;  %v6247_v46 = vld [vmem:[#allocation13_spill] sm:$0xff] }
  0xc1   : > { %4290 = vrcp.f32 %v815_v43  ;;  %v486_v11 = vadd.f32 %v5129_v8, %v4847_v55  ;;  %1273 = vmatmul.mubr.f32.gmra.mrb[10].mxu0 %v4999_v34  ;;  %v1631_v0 = vand.u32 4294901760, %v880_v38  ;;  %v1635_v9 = vand.u32 4294901760, %v888_v4 }
  0xc2   : > { %v1639_v14 = vand.u32 4294901760, %v896_v40  ;;  %v384_v35 = vmul.f32 -480.5, %v352_v45  ;;  %1279 = vmatprep.mubr.f32.mxu0 %v5005_v6  ;;  %v6246_v56 = vand.u32 4294901760, %v4954_v49  ;;  %v1643_v31 = vand.u32 4294901760, %v904_v13 }
  0xc3   : > { %v498_v5 = vrot.slane %v497_v50, 4  ;;  %v487_v47 = vadd.f32 %v6247_v46, %v486_v11  ;;  %v368_v7 = vmul.f32 %v336_v28, %v336_v28  ;;  %v5149_v54 = vsub.f32 %v880_v38, %v1631_v0 }
  0xc4   : > { %1371 = vmatprep.mubr.f32.mxu1 %v6246_v56  ;;  %v5151_v43 = vsub.f32 %v888_v4, %v1635_v9  ;;  %v5153_v48 = vsub.f32 %v896_v40, %v1639_v14  ;;  %4292 = vpow2.f32 %v767_v62  ;;  %v5155_v12 = vpack.c.bf16 %v1635_v9, %v1631_v0 }
  0xc5   : > { %v5157_v45 = vsub.f32 %v904_v13, %v1643_v31  ;;  %v499_v51 = vadd.f32 %v498_v5, %v497_v50  ;;  %v488_v49 = vadd.f32 %v5141_v53, %v487_v47  ;;  %1282 = vmatmul.mubr.f32.gmra.mrb[12].mxu0 %v5011_v3  ;;  %v6248_v56 = vand.u32 4294901760, %v4965_v22 }
  0xc6   : > { %v6184_v28 = vand.u32 4294901760, %v5149_v54  ;;  %v6183_v38 = vand.u32 4294901760, %v5151_v43  ;;  %v6182_v4 = vand.u32 4294901760, %v5153_v48  ;;  %v428_v40 = vmul.f32 1.442695, %v384_v35  ;;  %3989 = vmatpush1.bf16.xpose.msra.mxu0 %v3988_v57  ;;  %1288 = vmatprep.mubr.f32.mxu0 %v5044_v44 }
  0xc7   : > { %1375 = vmatmul.mubr.f32.vlgmr.msra.gmra.mrb[8].mxu1 %v6248_v56  ;;  %v500_v62 = vrot.slane %v499_v51, 2  ;;  %v489_v13 = vrot.slane %v488_v49, 4  ;;  %v6189_v50 = vand.u32 4294901760, %v5157_v45  ;;  %v5170_v11 = vsub.f32 %v5115_v58, %v4716_v15  ;;  %3999 = vmatprep.subr.bf16.mxu0 %v5155_v12 }
  0xc8   : > { %3993 = vmatpush1.bf16.xpose.msra.mxu1 %v4910_v36  ;;  %v6249_v22 = vand.u32 4294901760, %v4992_v41  ;;  %v1767_v0 = vsub.f32 %v5149_v54, %v6184_v28  ;;  %v1779_v36 = vsub.f32 %v5151_v43, %v6183_v38  ;;  %4294 = vpow2.f32 %v783_v27  ;;  %v5181_v9 = vpop.eup %4286 }
  0xc9   : > { %v392_v57 = vmul.f32 -480.5, %v360_v63  ;;  %3995 = vmatprep.subr.bf16.mxu1 %v4887_v17  ;;  %v501_v35 = vadd.f32 %v500_v62, %v499_v51  ;;  %v490_v5 = vadd.f32 %v489_v13, %v488_v49  ;;  %v1791_v41 = vsub.f32 %v5153_v48, %v6182_v4  ;;  %1291 = vmatmul.mubr.f32.gmra.mrb[14].mxu0 %v5047_v24  ;;  %v6252_v62 = vld [vmem:[#allocation16_spill] sm:$0xff] }
  0xca   : > { %1382 = vmatprep.mubr.f32.mxu1 %v6249_v22  ;;  %v5188_v47 = vmul.f32 -480.5, %v368_v7  ;;  %v5190_v56 = vpop.eup %4288  ;;  %v6250_v27 = vand.u32 4294901760, %v4999_v34  ;;  %v5195_v63 = vpack.c.bf16 %v1643_v31, %v1639_v14  ;;  %v1768_v17 = vand.u32 4294901760, %v1767_v0  ;;  %1502 = vmatprep.mubr.f32.mxu0 %v6252_v62  ;;  %v6253_v14 = vld [vmem:[#allocation14_spill] sm:$0xff]  ;;  %v6254_v0 = vld [vmem:[#allocation15_spill] sm:$0xff] }
  0xcb   : > { %v1780_v22 = vand.u32 4294901760, %v1779_v36  ;;  %4296 = vpow2.f32 %v428_v40  ;;  %v4291_v51 = vpop.eup %4290  ;;  %v6251_v49 = vand.u32 4294901760, %v5005_v6  ;;  %v502_v7 = vrot.slane %v501_v35, 1 }
  0xcc   : > { %1386 = vmatmul.mubr.f32.gmra.mrb[10].mxu1 %v6250_v27  ;;  %v491_v13 = vrot.slane %v490_v5, 2  ;;  %v1803_v4 = vsub.f32 %v5157_v45, %v6189_v50  ;;  %v879_v31 = vmul.f32 %v4291_v51, %v6253_v14  ;;  %v887_v36 = vmul.f32 %v4291_v51, %v6254_v0 }
  0xcd   : > { %1393 = vmatprep.mubr.f32.mxu1 %v6251_v49  ;;  %v4006_v40 = vpack.c.bf16 %v1780_v22, %v1768_v17  ;;  %v895_v27 = vmul.f32 %v4291_v51, %v4889_v60  ;;  %v903_v6 = vmul.f32 %v4291_v51, %v4908_v32  ;;  %v503_v49 = vadd.f32 %v502_v7, %v501_v35 }
  0xce   : > { %v492_v38 = vadd.f32 %v491_v13, %v490_v5  ;;  %v1792_v28 = vand.u32 4294901760, %v1791_v41  ;;  %v5209_v21 = vpop.eup %4292  ;;  %v6255_v20 = vand.u32 4294901760, %v5011_v3  ;;  %1504 = vmatmul.mubr.f32.vlgmr.msra.gmra.mrb[16].mxu0 %v4956_v26  ;;  %v1633_v50 = vand.u32 4294901760, %v879_v31 }
  0xcf   : > { %v1637_v34 = vand.u32 4294901760, %v887_v36  ;;  %v1641_v14 = vand.u32 4294901760, %v895_v27  ;;  %v834_v17 = vadd.f32 %v5190_v56, %v5181_v9  ;;  %v6256_v60 = vand.u32 4294901760, %v5044_v44  ;;  %1509 = vmatprep.mubr.f32.mxu0 %v4981_v25 }
  0xd0   : > { %1397 = vmatmul.mubr.f32.gmra.mrb[12].mxu1 %v6255_v20  ;;  %v1645_v32 = vand.u32 4294901760, %v903_v6  ;;  %4298 = vrcp.f32 %v503_v49  ;;  %v493_v35 = vrot.slane %v492_v38, 1  ;;  %v1804_v5 = vand.u32 4294901760, %v1803_v4 }
  0xd1   : > { %3997 = vmatpush1.bf16.xpose.msra.mxu1 %v4948_v29  ;;  %1404 = vmatprep.mubr.f32.mxu1 %v6256_v60  ;;  %v5219_v41 = vpack.c.bf16 %v1637_v34, %v1633_v50  ;;  %v5221_v20 = vsub.f32 %v879_v31, %v1633_v50  ;;  %v5223_v3 = vsub.f32 %v887_v36, %v1637_v34  ;;  %v444_v22 = vmul.f32 1.442695, %v392_v57 }
  0xd2   : > { %4007 = vmatprep.subr.bf16.mxu1 %v4006_v40  ;;  %v5226_v51 = vsub.f32 %v895_v27, %v1641_v14  ;;  %v5228_v29 = vsub.f32 %v903_v6, %v1645_v32  ;;  %v494_v44 = vadd.f32 %v493_v35, %v492_v38  ;;  %v5232_v13 = vpop.eup %4294  ;;  %v6257_v4 = vand.u32 4294901760, %v5047_v24  ;;  %1511 = vmatmul.mubr.f32.gmra.mrb[18].mxu0 %v4985_v33 }
  0xd3   : > { %4001 = vmatpush1.bf16.xpose.msra.mxu0 %v5219_v41  ;;  %v6193_v50 = vand.u32 4294901760, %v5221_v20  ;;  %v6192_v34 = vand.u32 4294901760, %v5223_v3  ;;  %v6258_v57 = vand.u32 4294901760, %v5149_v54  ;;  %v6259_v31 = vand.u32 4294901760, %v5151_v43  ;;  %1516 = vmatprep.mubr.f32.mxu0 %v4994_v61 }
  0xd4   : > { %1408 = vmatmul.mubr.f32.gmra.mrb[14].mxu1 %v6257_v4  ;;  %v835_v38 = vadd.f32 %v5209_v21, %v834_v17  ;;  %4300 = vrcp.f32 %v494_v44  ;;  %v4010_v36 = vpack.c.bf16 %v1804_v5, %v1792_v28  ;;  %v6191_v24 = vand.u32 4294901760, %v5226_v51  ;;  %4003 = vmatprep.subr.bf16.mxu0 %v5195_v63 }
  0xd5   : > { %v5243_v0 = vpack.c.bf16 %v6259_v31, %v6258_v57  ;;  %1603 = vmatprep.mubr.f32.mxu1 %v6252_v62  ;;  %v6190_v40 = vand.u32 4294901760, %v5228_v29  ;;  %v5250_v27 = vpop.eup %4296  ;;  %v1773_v6 = vsub.f32 %v5221_v20, %v6193_v50  ;;  %v1785_v62 = vsub.f32 %v5223_v3, %v6192_v34 }
  0xd6   : > { %4302 = vpow2.f32 %v444_v22  ;;  %v641_v28 = vsub.f32 %v5115_v58, %v4718_v16  ;;  %v5262_v49 = vpack.c.bf16 %v1645_v32, %v1641_v14  ;;  %v1797_v17 = vsub.f32 %v5226_v51, %v6191_v24  ;;  %1518 = vmatmul.mubr.f32.gmra.mrb[20].mxu0 %v5001_v59 }
  0xd7   : > { %v1809_v60 = vsub.f32 %v5228_v29, %v6190_v40  ;;  %v836_v35 = vadd.f32 %v5232_v13, %v835_v38  ;;  %v1774_v5 = vand.u32 4294901760, %v1773_v6  ;;  %v1786_v44 = vand.u32 4294901760, %v1785_v62  ;;  %1523 = vmatprep.mubr.f32.mxu0 %v5026_v30 }
  0xd8   : > { %1605 = vmatmul.mubr.f32.vlgmr.msra.gmra.mrb[16].mxu1 %v4956_v26  ;;  %v649_v22 = vsub.f32 %v5115_v58, %v4721_v18  ;;  %v657_v14 = vsub.f32 %v5115_v58, %v4723_v19  ;;  %v1798_v32 = vand.u32 4294901760, %v1797_v17  ;;  %v665_v31 = vmul.f32 %v5170_v11, %v5170_v11 }
  0xd9   : > { %1610 = vmatprep.mubr.f32.mxu1 %v4981_v25  ;;  %v1810_v4 = vand.u32 4294901760, %v1809_v60  ;;  %v837_v57 = vrot.slane %v836_v35, 4  ;;  %v4008_v38 = vpack.c.bf16 %v1786_v44, %v1774_v5  ;;  %v673_v58 = vmul.f32 %v641_v28, %v641_v28 }
  0xda   : > { %v4299_v62 = vpop.eup %4298  ;;  %v681_v25 = vmul.f32 %v649_v22, %v649_v22  ;;  %v689_v17 = vmul.f32 %v657_v14, %v657_v14  ;;  %v5290_v44 = vmul.f32 1.442695, %v5188_v47  ;;  %1525 = vmatmul.mubr.f32.gmra.mrb[22].mxu0 %v5028_v52  ;;  %v697_v22 = vmul.f32 -480.5, %v665_v31 }
  0xdb   : > { %v4012_v40 = vpack.c.bf16 %v1810_v4, %v1798_v32  ;;  %v838_v24 = vadd.f32 %v837_v57, %v836_v35  ;;  %4005 = vmatpush1.bf16.xpose.msra.mxu0 %v5262_v49  ;;  %4009 = vmatpush1.bf16.xpose.msra.mxu1 %v4008_v38  ;;  %v559_v11 = vmul.f32 %v4299_v62, %v5074_v23  ;;  %v705_v47 = vmul.f32 -480.5, %v673_v58 }
  0xdc   : > { %v567_v60 = vmul.f32 %v4299_v62, %v5092_v42  ;;  %v575_v5 = vmul.f32 %v4299_v62, %v5098_v37  ;;  %1612 = vmatmul.mubr.f32.gmra.mrb[18].mxu1 %v4985_v33  ;;  %v583_v28 = vmul.f32 %v4299_v62, %v5110_v39  ;;  %v5297_v14 = vsub.f32 %v5120_v2, %v4716_v15 }
  0xdd   : > { %v839_v35 = vrot.slane %v838_v24, 2  ;;  %1617 = vmatprep.mubr.f32.mxu1 %v4994_v61  ;;  %v5300_v23 = vand.u32 4294901760, %v559_v11  ;;  %4011 = vmatprep.subr.bf16.mxu1 %v4010_v36  ;;  %v6261_v33 = vpack.c.bf16 %v5151_v43, %v5149_v54  ;;  %v713_v57 = vmul.f32 -480.5, %v681_v25 }
  0xde   : > { %v5302_v42 = vand.u32 4294901760, %v567_v60  ;;  %v5304_v37 = vand.u32 4294901760, %v575_v5  ;;  %v4301_v32 = vpop.eup %4300  ;;  %v5309_v39 = vand.u32 4294901760, %v583_v28  ;;  %v721_v31 = vmul.f32 -480.5, %v689_v17 }
  0xdf   : > { %4015 = vmatprep.subr.bf16.mxu0 %v6261_v33  ;;  %v840_v4 = vadd.f32 %v839_v35, %v838_v24  ;;  %v5314_v61 = vsub.f32 %v559_v11, %v5300_v23  ;;  %v558_v36 = vmul.f32 %v4301_v32, %v5129_v8  ;;  %v566_v58 = vmul.f32 %v4301_v32, %v4847_v55 }
  0xe0   : > { %6260 = vst [vmem:[#allocation13_spill] sm:$0xff] %v5304_v37  ;;  %v5311_v38 = vpop.eup %4302  ;;  %v5318_v62 = vsub.f32 %v567_v60, %v5302_v42  ;;  %1619 = vmatmul.mubr.f32.gmra.mrb[20].mxu1 %v5001_v59  ;;  %v5323_v54 = vsub.f32 %v575_v5, %v5304_v37  ;;  %v574_v43 = vmul.f32 %v4301_v32, %v6247_v46  ;;  %v733_v35 = vmul.f32 1.442695, %v697_v22 }
  0xe1   : > { %v5327_v24 = vsub.f32 %v583_v28, %v5309_v39  ;;  %v582_v25 = vmul.f32 %v4301_v32, %v5141_v53  ;;  %v6196_v17 = vand.u32 4294901760, %v5314_v61  ;;  %v5331_v8 = vand.u32 4294901760, %v558_v36  ;;  %1624 = vmatprep.mubr.f32.mxu1 %v5026_v30 }
  0xe2   : > { %v6194_v55 = vand.u32 4294901760, %v5318_v62  ;;  %v5335_v11 = vand.u32 4294901760, %v566_v58  ;;  %v6195_v59 = vand.u32 4294901760, %v5323_v54  ;;  %v5338_v60 = vand.u32 4294901760, %v574_v43 }
  0xe3   : > { %v6197_v46 = vand.u32 4294901760, %v5327_v24  ;;  %v5341_v5 = vand.u32 4294901760, %v582_v25  ;;  %v1706_v53 = vsub.f32 %v5314_v61, %v6196_v17  ;;  %v5347_v28 = vsub.f32 %v558_v36, %v5331_v8  ;;  %4013 = vmatpush1.bf16.xpose.msra.mxu1 %v4012_v40 }
  0xe4   : > { %6262 = vst [vmem:[#allocation16_spill] sm:$0xff] %v5335_v11  ;;  %v5350_v30 = vsub.f32 %v566_v58, %v5335_v11  ;;  %v1721_v32 = vsub.f32 %v5318_v62, %v6194_v55  ;;  %1626 = vmatmul.mubr.f32.gmra.mrb[22].mxu1 %v5028_v52  ;;  %v5357_v33 = vsub.f32 %v574_v43, %v5338_v60  ;;  %v841_v34 = vrot.slane %v840_v4, 1 }
  0xe5   : > { %4023 = vmatprep.subr.bf16.mxu1 %v5155_v12  ;;  %v749_v50 = vmul.f32 1.442695, %v705_v47  ;;  %v1707_v36 = vand.u32 4294901760, %v1706_v53  ;;  %v6198_v40 = vand.u32 4294901760, %v5347_v28  ;;  %1869 = vmatprep.mubr.f32.mxu1 %v5300_v23  ;;  %v765_v22 = vmul.f32 1.442695, %v713_v57 }
  0xe6   : > { %v6201_v58 = vand.u32 4294901760, %v5350_v30  ;;  %v1736_v55 = vsub.f32 %v5323_v54, %v6195_v59  ;;  %v6200_v52 = vand.u32 4294901760, %v5357_v33  ;;  %v5370_v43 = vsub.f32 %v5327_v24, %v6197_v46 }
  0xe7   : > { %v5373_v47 = vsub.f32 %v582_v25, %v5341_v5  ;;  %1708 = vmatprep.mubr.f32.mxu0 %v1707_v36  ;;  %v1712_v53 = vsub.f32 %v5347_v28, %v6198_v40  ;;  %v842_v59 = vadd.f32 %v841_v34, %v840_v4  ;;  %4304 = vpow2.f32 %v733_v35 }
  0xe8   : > { %v1727_v57 = vsub.f32 %v5350_v30, %v6201_v58  ;;  %v1722_v17 = vand.u32 4294901760, %v1721_v32  ;;  %v1742_v46 = vsub.f32 %v5357_v33, %v6200_v52  ;;  %4306 = vpow2.f32 %v749_v50 }
  0xe9   : > { %v781_v6 = vmul.f32 1.442695, %v721_v31  ;;  %v1713_v25 = vand.u32 4294901760, %v1712_v53  ;;  %v6199_v36 = vand.u32 4294901760, %v5373_v47  ;;  %4308 = vrcp.f32 %v842_v59 }
  0xea   : > { %v321_v40 = vsub.f32 %v5120_v2, %v4718_v16  ;;  %v1728_v7 = vand.u32 4294901760, %v1727_v57  ;;  %v1737_v26 = vand.u32 4294901760, %v1736_v55  ;;  %1871 = vmatmul.mubr.f32.vlgmr.msra.gmra.mrb[24].mxu1 %v5331_v8  ;;  %4310 = vpow2.f32 %v765_v22 }
  0xeb   : > { %v329_v34 = vsub.f32 %v5120_v2, %v4721_v18  ;;  %1714 = vmatmul.mubr.f32.vlgmr.msra.gmra.mrb[24].mxu0 %v1713_v25  ;;  %4025 = vmatpush1.bf16.xpose.msra.mxu1 %v5219_v41  ;;  %4312 = vpow2.f32 %v781_v6  ;;  %v337_v50 = vsub.f32 %v5120_v2, %v4723_v19  ;;  %v345_v4 = vmul.f32 %v5297_v14, %v5297_v14  ;;  %v6265_v6 = vld [vmem:[#allocation11_spill] sm:$0xff] }
  0xec   : > { %v353_v31 = vmul.f32 %v321_v40, %v321_v40  ;;  %v6263_v55 = vpack.c.bf16 %v5223_v3, %v5221_v20  ;;  %1723 = vmatprep.mubr.f32.mxu0 %v1722_v17  ;;  %v1743_v59 = vand.u32 4294901760, %v1742_v46  ;;  %v312_v32 = vsub.f32 %v5082_v10, %v4716_v15  ;;  %1876 = vmatprep.mubr.f32.mxu1 %v5302_v42 }
  0xed   : > { %v361_v35 = vmul.f32 %v329_v34, %v329_v34  ;;  %v6264_v22 = vsub.s32 7, %v4708_v1  ;;  %v6266_v2 = vpack.c.bf16 %v5157_v45, %v5153_v48  ;;  %v1757_v14 = vsub.f32 %v5373_v47, %v6199_v36  ;;  %4027 = vmatprep.subr.bf16.mxu1 %v5195_v63 }
  0xee   : > { %4017 = vmatpush1.bf16.xpose.msra.mxu0 %v6263_v55  ;;  %v369_v17 = vmul.f32 %v337_v50, %v337_v50  ;;  %v377_v46 = vmul.f32 -480.5, %v345_v4  ;;  %v385_v40 = vmul.f32 -480.5, %v353_v31  ;;  %1878 = vmatmul.mubr.f32.gmra.mrb[26].mxu1 %v5335_v11  ;;  %v344_v57 = vmul.f32 %v312_v32, %v312_v32 }
  0xef   : > { %v620_v53 = vrot.slane %v6265_v6, %v6264_v22  ;;  %4019 = vmatprep.subr.bf16.mxu0 %v6266_v2  ;;  %v393_v10 = vmul.f32 -480.5, %v361_v35  ;;  %1729 = vmatmul.mubr.f32.gmra.mrb[26].mxu0 %v1728_v7  ;;  %v1752_v4 = vand.u32 4294901760, %v5370_v43 }
  0xf0   : > { %1883 = vmatprep.mubr.f32.mxu1 %v5304_v37  ;;  %v401_v55 = vmul.f32 -480.5, %v369_v17  ;;  %v414_v22 = vmul.f32 1.442695, %v377_v46  ;;  %v430_v2 = vmul.f32 1.442695, %v385_v40  ;;  %1738 = vmatprep.mubr.f32.mxu0 %v1737_v26  ;;  %v376_v36 = vmul.f32 -480.5, %v344_v57 }
  0xf1   : > { %v636_v25 = vsub.f32 %v620_v53, %v4716_v15  ;;  %v644_v34 = vsub.f32 %v620_v53, %v4718_v16  ;;  %v652_v50 = vsub.f32 %v620_v53, %v4721_v18  ;;  %v446_v31 = vmul.f32 1.442695, %v393_v10  ;;  %v5417_v35 = vpop.eup %4304 }
  0xf2   : > { %4314 = vpow2.f32 %v414_v22  ;;  %v462_v32 = vmul.f32 1.442695, %v401_v55  ;;  %v5419_v7 = vpop.eup %4306  ;;  %v1758_v37 = vand.u32 4294901760, %v1757_v14  ;;  %1885 = vmatmul.mubr.f32.gmra.mrb[28].mxu1 %v5338_v60  ;;  %v412_v17 = vmul.f32 1.442695, %v376_v36 }
  0xf3   : > { %v668_v52 = vmul.f32 %v636_v25, %v636_v25  ;;  %v676_v58 = vmul.f32 %v644_v34, %v644_v34  ;;  %v684_v11 = vmul.f32 %v652_v50, %v652_v50  ;;  %4316 = vpow2.f32 %v430_v2  ;;  %v4309_v26 = vpop.eup %4308  ;;  %1744 = vmatmul.mubr.f32.gmra.mrb[28].mxu0 %v1743_v59  ;;  %4029 = vmatpush1.bf16.xpose.msra.mxu1 %v5262_v49 }
  0xf4   : > { %v825_v43 = vadd.f32 %v5419_v7, %v5417_v35  ;;  %4318 = vpow2.f32 %v446_v31  ;;  %v660_v40 = vsub.f32 %v620_v53, %v4723_v19  ;;  %v5426_v57 = vpop.eup %4310  ;;  %v6267_v14 = vpack.c.bf16 %v5228_v29, %v5226_v51  ;;  %1753 = vmatprep.mubr.f32.mxu0 %v1752_v4  ;;  %1890 = vmatprep.mubr.f32.mxu1 %v5309_v39 }
  0xf5   : > { %v700_v46 = vmul.f32 -480.5, %v668_v52  ;;  %v708_v10 = vmul.f32 -480.5, %v676_v58  ;;  %v5432_v52 = vmul.f32 %v4309_v26, %v5181_v9  ;;  %v5435_v36 = vmul.f32 %v4309_v26, %v5190_v56  ;;  %v5437_v25 = vpop.eup %4312  ;;  %4039 = vmatprep.subr.bf16.mxu1 %v5155_v12 }
  0xf6   : > { %4021 = vmatpush1.bf16.xpose.msra.mxu0 %v6267_v14  ;;  %4320 = vpow2.f32 %v462_v32  ;;  %v716_v59 = vmul.f32 -480.5, %v684_v11  ;;  %v826_v58 = vadd.f32 %v5426_v57, %v825_v43  ;;  %v5443_v53 = vmul.f32 %v4309_v26, %v5209_v21  ;;  %1892 = vmatmul.mubr.f32.gmra.mrb[30].mxu1 %v5341_v5 }
  0xf7   : > { %4031 = vmatprep.subr.bf16.mxu0 %v5243_v0  ;;  %4322 = vpow2.f32 %v412_v17  ;;  %v2349_v9 = vand.u32 4294901760, %v5432_v52  ;;  %v2353_v56 = vand.u32 4294901760, %v5435_v36  ;;  %v5450_v11 = vmul.f32 %v4309_v26, %v5232_v13  ;;  %1759 = vmatmul.mubr.f32.gmra.mrb[30].mxu0 %v1758_v37 }
  0xf8   : > { %v739_v0 = vmul.f32 1.442695, %v700_v46  ;;  %v6268_v34 = vand.u32 4294901760, %v5314_v61  ;;  %4324 = vpow2.f32 %v5290_v44  ;;  %v827_v21 = vadd.f32 %v5437_v25, %v826_v58  ;;  %1979 = vmatprep.mubr.f32.mxu0 %v5314_v61 }
  0xf9   : > { %v692_v55 = vmul.f32 %v660_v40, %v660_v40  ;;  %v755_v22 = vmul.f32 1.442695, %v708_v10  ;;  %v6269_v12 = vand.u32 4294901760, %v5221_v20  ;;  %v6270_v2 = vand.u32 4294901760, %v5223_v3 }
  0xfa   : > { %2089 = vmatprep.mubr.f32.mxu1 %v6268_v34  ;;  %v5462_v13 = vsub.f32 %v5432_v52, %v2349_v9  ;;  %v5465_v37 = vsub.f32 %v5435_v36, %v2353_v56  ;;  %v771_v4 = vmul.f32 1.442695, %v716_v59  ;;  %v6271_v44 = vand.u32 4294901760, %v5153_v48 }
  0xfb   : > { %v4032_v50 = vpack.c.bf16 %v6270_v2, %v6269_v12  ;;  %v6272_v31 = vand.u32 4294901760, %v5157_v45  ;;  %v828_v17 = vrot.slane %v827_v21, 4  ;;  %4326 = vpow2.f32 %v739_v0 }
  0xfc   : > { %v6273_v61 = vand.u32 4294901760, %v5347_v28  ;;  %v2357_v20 = vand.u32 4294901760, %v5443_v53  ;;  %v2361_v3 = vand.u32 4294901760, %v5450_v11  ;;  %v2484_v46 = vand.u32 4294901760, %v5462_v13  ;;  %v5477_v43 = vpop.eup %4314 }
  0xfd   : > { %v4034_v32 = vpack.c.bf16 %v6272_v31, %v6271_v44  ;;  %v2496_v26 = vand.u32 4294901760, %v5465_v37  ;;  %1982 = vmatmul.mubr.f32.vlgmr.msra.gmra.mrb[32].mxu0 %v5347_v28  ;;  %v829_v48 = vadd.f32 %v828_v17, %v827_v21  ;;  %v724_v45 = vmul.f32 -480.5, %v692_v55  ;;  %v5481_v40 = vpop.eup %4316 }
  0xfe   : > { %2093 = vmatmul.mubr.f32.vlgmr.msra.gmra.mrb[32].mxu1 %v6273_v61  ;;  %4328 = vpow2.f32 %v755_v22  ;;  %4033 = vmatpush1.bf16.xpose.msra.mxu0 %v4032_v50  ;;  %v2485_v10 = vsub.f32 %v5462_v13, %v2484_v46  ;;  %v5490_v28 = vpop.eup %4318  ;;  %v513_v36 = vadd.f32 %v5481_v40, %v5477_v43  ;;  %v6275_v58 = vand.u32 4294901760, %v5350_v30 }
  0xff   : > { %4041 = vmatpush1.bf16.xpose.msra.mxu1 %v5219_v41  ;;  %1988 = vmatprep.mubr.f32.mxu0 %v5318_v62  ;;  %v2497_v14 = vsub.f32 %v5465_v37, %v2496_v26  ;;  %4330 = vpow2.f32 %v771_v4  ;;  %v6274_v41 = vand.u32 4294901760, %v5318_v62  ;;  %v830_v52 = vrot.slane %v829_v48, 2 }
 0x100   : > { %4035 = vmatprep.subr.bf16.mxu0 %v4034_v32  ;;  %v5496_v59 = vpop.eup %4320  ;;  %4043 = vmatprep.subr.bf16.mxu1 %v5195_v63  ;;  %v5504_v0 = vsub.f32 %v5443_v53, %v2357_v20  ;;  %v5509_v62 = vsub.f32 %v5450_v11, %v2361_v3  ;;  %v2486_v34 = vand.u32 4294901760, %v2485_v10  ;;  %v6276_v22 = vand.u32 4294901760, %v5323_v54 }
 0x101   : > { %2100 = vmatprep.mubr.f32.mxu1 %v6274_v41  ;;  %v2498_v21 = vand.u32 4294901760, %v2497_v14  ;;  %v5511_v55 = vpop.eup %4322  ;;  %1991 = vmatmul.mubr.f32.gmra.mrb[34].mxu0 %v5350_v30  ;;  %v831_v63 = vadd.f32 %v830_v52, %v829_v48  ;;  %v514_v12 = vadd.f32 %v5490_v28, %v513_v36  ;;  %v787_v2 = vmul.f32 1.442695, %v724_v45 }
 0x102   : > { %2104 = vmatmul.mubr.f32.gmra.mrb[34].mxu1 %v6275_v58  ;;  %v294_v50 = vsub.s32 6, %v4708_v1  ;;  %1997 = vmatprep.mubr.f32.mxu0 %v5323_v54  ;;  %v6277_v4 = vand.u32 4294901760, %v5226_v51  ;;  %v6278_v44 = vand.u32 4294901760, %v5228_v29  ;;  %v504_v32 = vadd.f32 %v5511_v55, %v5250_v27  ;;  %v5525_v30 = vpop.eup %4324 }
 0x103   : > { %2111 = vmatprep.mubr.f32.mxu1 %v6276_v22  ;;  %v5527_v17 = vpack.c.bf16 %v2353_v56, %v2349_v9  ;;  %v832_v61 = vrot.slane %v831_v63, 1  ;;  %v515_v48 = vadd.f32 %v5496_v59, %v514_v12  ;;  %4332 = vpow2.f32 %v787_v2 }
 0x104   : > { %v4036_v31 = vpack.c.bf16 %v6278_v44, %v6277_v4  ;;  %v6279_v45 = vand.u32 4294901760, %v5357_v33  ;;  %v4054_v54 = vpack.c.bf16 %v2498_v21, %v2486_v34  ;;  %v505_v51 = vadd.f32 %v5311_v38, %v504_v32  ;;  %v6282_v32 = vld [vmem:[#allocation12_spill] sm:$0xff] }
 0x105   : > { %v6211_v29 = vand.u32 4294901760, %v5504_v0  ;;  %v6210_v10 = vand.u32 4294901760, %v5509_v62  ;;  %v5535_v14 = vpop.eup %4326  ;;  %2000 = vmatmul.mubr.f32.gmra.mrb[36].mxu0 %v5357_v33  ;;  %v833_v9 = vadd.f32 %v832_v61, %v831_v63  ;;  %v516_v56 = vrot.slane %v515_v48, 4 }
 0x106   : > { %2115 = vmatmul.mubr.f32.gmra.mrb[36].mxu1 %v6279_v45  ;;  %v616_v41 = vrot.slane %v6265_v6, %v294_v50  ;;  %4037 = vmatpush1.bf16.xpose.msra.mxu0 %v4036_v31  ;;  %v506_v52 = vadd.f32 %v5525_v30, %v505_v51  ;;  %v6280_v58 = vand.u32 4294901760, %v5327_v24  ;;  %v5566_v61 = vrot.slane %v6282_v32, %v294_v50 }
 0x107   : > { %4045 = vmatpush1.bf16.xpose.msra.mxu1 %v5262_v49  ;;  %2006 = vmatprep.mubr.f32.mxu0 %v5327_v24  ;;  %4334 = vrcp.f32 %v833_v9  ;;  %v517_v33 = vadd.f32 %v516_v56, %v515_v48  ;;  %v6281_v49 = vand.u32 4294901760, %v5373_v47  ;;  %v2509_v21 = vsub.f32 %v5504_v0, %v6211_v29 }
 0x108   : > { %v5542_v36 = vpop.eup %4328  ;;  %4047 = vmatprep.subr.bf16.mxu0 %v5527_v17  ;;  %2122 = vmatprep.mubr.f32.mxu1 %v6280_v58  ;;  %v507_v6 = vrot.slane %v506_v52, 4  ;;  %v2521_v22 = vsub.f32 %v5509_v62, %v6210_v10  ;;  %v635_v12 = vsub.f32 %v616_v41, %v4716_v15  ;;  %v643_v2 = vsub.f32 %v616_v41, %v4718_v16 }
 0x109   : > { %v5547_v34 = vpop.eup %4330  ;;  %4055 = vmatprep.subr.bf16.mxu1 %v4054_v54  ;;  %v852_v24 = vadd.f32 %v5542_v36, %v5535_v14  ;;  %2009 = vmatmul.mubr.f32.gmra.mrb[38].mxu0 %v5373_v47  ;;  %v518_v63 = vrot.slane %v517_v33, 2  ;;  %v651_v48 = vsub.f32 %v616_v41, %v4721_v18  ;;  %v659_v47 = vsub.f32 %v616_v41, %v4723_v19 }
 0x10a   : > { %2126 = vmatmul.mubr.f32.gmra.mrb[38].mxu1 %v6281_v49  ;;  %2220 = vmatprep.mubr.f32.mxu0 %v5300_v23  ;;  %v508_v4 = vadd.f32 %v507_v6, %v506_v52  ;;  %v2510_v54 = vand.u32 4294901760, %v2509_v21  ;;  %v2522_v51 = vand.u32 4294901760, %v2521_v22  ;;  %v667_v56 = vmul.f32 %v635_v12, %v635_v12  ;;  %v6283_v49 = vld [vmem:[#allocation16_spill] sm:$0xff] }
 0x10b   : > { %2321 = vmatprep.mubr.f32.mxu1 %v5300_v23  ;;  %v853_v44 = vadd.f32 %v5547_v34, %v852_v24  ;;  %v519_v31 = vadd.f32 %v518_v63, %v517_v33  ;;  %v5578_v23 = vpack.c.bf16 %v2361_v3, %v2357_v20  ;;  %v675_v41 = vmul.f32 %v643_v2, %v643_v2  ;;  %v6284_v63 = vld [vmem:[#allocation13_spill] sm:$0xff] }
 0x10c   : > { %v509_v45 = vrot.slane %v508_v4, 2  ;;  %v4062_v58 = vpack.c.bf16 %v5465_v37, %v5462_v13  ;;  %v5589_v11 = vsub.f32 %v5566_v61, %v4718_v16  ;;  %v683_v20 = vmul.f32 %v651_v48, %v651_v48 }
 0x10d   : > { %v5571_v9 = vpop.eup %4332  ;;  %2222 = vmatmul.mubr.f32.vlgmr.msra.gmra.mrb[40].mxu0 %v5331_v8  ;;  %v520_v50 = vrot.slane %v519_v31, 1  ;;  %v691_v3 = vmul.f32 %v659_v47, %v659_v47  ;;  %v5596_v22 = vsub.f32 %v5566_v61, %v4721_v18  ;;  %v699_v12 = vmul.f32 -480.5, %v667_v56 }
 0x10e   : > { %2323 = vmatmul.mubr.f32.vlgmr.msra.gmra.mrb[40].mxu1 %v5331_v8  ;;  %2227 = vmatprep.mubr.f32.mxu0 %v5302_v42  ;;  %v510_v52 = vadd.f32 %v509_v45, %v508_v4  ;;  %v4066_v8 = vpack.c.bf16 %v5509_v62, %v5504_v0  ;;  %v854_v53 = vadd.f32 %v5571_v9, %v853_v44  ;;  %v707_v2 = vmul.f32 -480.5, %v675_v41 }
 0x10f   : > { %2328 = vmatprep.mubr.f32.mxu1 %v5302_v42  ;;  %v521_v33 = vadd.f32 %v520_v50, %v519_v31  ;;  %v5592_v42 = vpack.c.bf16 %v2522_v51, %v2510_v54  ;;  %v6285_v4 = vsub.s32 7, %v4708_v1  ;;  %v715_v50 = vmul.f32 -480.5, %v683_v20 }
 0x110   : > { %v511_v6 = vrot.slane %v510_v52, 1  ;;  %v855_v21 = vrot.slane %v854_v53, 4  ;;  %v362_v13 = vmul.f32 %v5596_v22, %v5596_v22 }
 0x111   : > { %v4335_v24 = vpop.eup %4334  ;;  %2229 = vmatmul.mubr.f32.gmra.mrb[42].mxu0 %v6283_v49  ;;  %4336 = vrcp.f32 %v521_v33  ;;  %v299_v44 = vrot.slane %v6282_v32, %v6285_v4  ;;  %v723_v33 = vmul.f32 -480.5, %v691_v3 }
 0x112   : > { %2330 = vmatmul.mubr.f32.gmra.mrb[42].mxu1 %v6283_v49  ;;  %v881_v31 = vmul.f32 %v4335_v24, %v5417_v35  ;;  %v889_v48 = vmul.f32 %v4335_v24, %v5419_v7  ;;  %2234 = vmatprep.mubr.f32.mxu0 %v6284_v63  ;;  %v897_v47 = vmul.f32 %v4335_v24, %v5426_v57  ;;  %v737_v7 = vmul.f32 1.442695, %v699_v12 }
 0x113   : > { %2335 = vmatprep.mubr.f32.mxu1 %v6284_v63  ;;  %v905_v45 = vmul.f32 %v4335_v24, %v5437_v25  ;;  %v512_v54 = vadd.f32 %v511_v6, %v510_v52  ;;  %v856_v51 = vadd.f32 %v855_v21, %v854_v53  ;;  %v315_v57 = vsub.f32 %v299_v44, %v4716_v15 }
 0x114   : > { %v2351_v56 = vand.u32 4294901760, %v881_v31  ;;  %v2355_v41 = vand.u32 4294901760, %v889_v48  ;;  %v2359_v49 = vand.u32 4294901760, %v897_v47  ;;  %v753_v53 = vmul.f32 1.442695, %v707_v2 }
 0x115   : > { %v2363_v1 = vand.u32 4294901760, %v905_v45  ;;  %2236 = vmatmul.mubr.f32.gmra.mrb[44].mxu0 %v5338_v60  ;;  %4338 = vrcp.f32 %v512_v54  ;;  %v857_v35 = vrot.slane %v856_v51, 2  ;;  %v323_v6 = vsub.f32 %v299_v44, %v4718_v16 }
 0x116   : > { %2337 = vmatmul.mubr.f32.gmra.mrb[44].mxu1 %v5338_v60  ;;  %v5612_v25 = vpack.c.bf16 %v2355_v41, %v2351_v56  ;;  %v5614_v32 = vsub.f32 %v881_v31, %v2351_v56  ;;  %v5616_v52 = vsub.f32 %v889_v48, %v2355_v41  ;;  %2241 = vmatprep.mubr.f32.mxu0 %v5309_v39  ;;  %v769_v63 = vmul.f32 1.442695, %v715_v50 }
 0x117   : > { %2342 = vmatprep.mubr.f32.mxu1 %v5309_v39  ;;  %v5619_v20 = vsub.f32 %v897_v47, %v2359_v49  ;;  %v5621_v3 = vsub.f32 %v905_v45, %v2363_v1  ;;  %v858_v60 = vadd.f32 %v857_v35, %v856_v51  ;;  %v785_v12 = vmul.f32 1.442695, %v723_v33 }
 0x118   : > { %4049 = vmatpush1.bf16.xpose.msra.mxu0 %v5612_v25  ;;  %v6214_v21 = vand.u32 4294901760, %v5614_v32  ;;  %v6213_v24 = vand.u32 4294901760, %v5616_v52  ;;  %v331_v16 = vsub.f32 %v299_v44, %v4721_v18  ;;  %4340 = vpow2.f32 %v737_v7 }
 0x119   : > { %4051 = vmatprep.subr.bf16.mxu0 %v5578_v23  ;;  %2243 = vmatmul.mubr.f32.gmra.mrb[46].mxu0 %v5341_v5  ;;  %v6206_v39 = vand.u32 4294901760, %v5619_v20  ;;  %v6207_v2 = vand.u32 4294901760, %v5621_v3  ;;  %v859_v4 = vrot.slane %v858_v60, 1  ;;  %v339_v47 = vsub.f32 %v299_v44, %v4723_v19 }
 0x11a   : > { %2344 = vmatmul.mubr.f32.gmra.mrb[46].mxu1 %v5341_v5  ;;  %v2491_v31 = vsub.f32 %v5614_v32, %v6214_v21  ;;  %v2503_v48 = vsub.f32 %v5616_v52, %v6213_v24  ;;  %v5640_v5 = vpack.c.bf16 %v2363_v1, %v2359_v49  ;;  %4342 = vpow2.f32 %v753_v53 }
 0x11b   : > { %v4337_v45 = vpop.eup %4336  ;;  %v2515_v54 = vsub.f32 %v5619_v20, %v6206_v39  ;;  %v2527_v18 = vsub.f32 %v5621_v3, %v6207_v2  ;;  %v860_v49 = vadd.f32 %v859_v4, %v858_v60  ;;  %4344 = vpow2.f32 %v769_v63 }
 0x11c   : > { %v2492_v51 = vand.u32 4294901760, %v2491_v31  ;;  %v2504_v50 = vand.u32 4294901760, %v2503_v48  ;;  %v561_v33 = vmul.f32 %v4337_v45, %v5477_v43  ;;  %v569_v56 = vmul.f32 %v4337_v45, %v5481_v40 }
 0x11d   : > { %v577_v44 = vmul.f32 %v4337_v45, %v5490_v28  ;;  %v585_v41 = vmul.f32 %v4337_v45, %v5496_v59  ;;  %v347_v39 = vmul.f32 %v315_v57, %v315_v57  ;;  %v2516_v53 = vand.u32 4294901760, %v2515_v54 }
 0x11e   : > { %v4056_v1 = vpack.c.bf16 %v2504_v50, %v2492_v51  ;;  %v5652_v35 = vand.u32 4294901760, %v561_v33  ;;  %v5654_v7 = vand.u32 4294901760, %v569_v56  ;;  %4346 = vpow2.f32 %v785_v12 }
 0x11f   : > { %v4339_v2 = vpop.eup %4338  ;;  %v5656_v31 = vand.u32 4294901760, %v577_v44  ;;  %v5658_v48 = vand.u32 4294901760, %v585_v41  ;;  %v2528_v28 = vand.u32 4294901760, %v2527_v18  ;;  %4348 = vrcp.f32 %v860_v49 }
 0x120   : > { %4053 = vmatpush1.bf16.xpose.msra.mxu0 %v5640_v5  ;;  %4057 = vmatpush1.bf16.xpose.msra.mxu1 %v4056_v1  ;;  %v5662_v43 = vsub.f32 %v561_v33, %v5652_v35  ;;  %v560_v40 = vmul.f32 %v4339_v2, %v5511_v55  ;;  %v5666_v59 = vsub.f32 %v569_v56, %v5654_v7 }
 0x121   : > { %4059 = vmatprep.subr.bf16.mxu1 %v5592_v42  ;;  %4063 = vmatprep.subr.bf16.mxu0 %v4062_v58  ;;  %v568_v57 = vmul.f32 %v4339_v2, %v5250_v27  ;;  %v5674_v60 = vsub.f32 %v577_v44, %v5656_v31  ;;  %v576_v63 = vmul.f32 %v4339_v2, %v5311_v38 }
 0x122   : > { %v6209_v55 = vand.u32 4294901760, %v5662_v43  ;;  %v5678_v12 = vand.u32 4294901760, %v560_v40  ;;  %v6208_v4 = vand.u32 4294901760, %v5666_v59  ;;  %2587 = vmatprep.mubr.f32.mxu1 %v5652_v35  ;;  %v355_v42 = vmul.f32 %v323_v6, %v323_v6  ;;  %v5690_v38 = vpop.eup %4340 }
 0x123   : > { %v5682_v45 = vand.u32 4294901760, %v568_v57  ;;  %v5684_v58 = vand.u32 4294901760, %v576_v63  ;;  %v5687_v27 = vsub.f32 %v585_v41, %v5658_v48  ;;  %v584_v54 = vmul.f32 %v4339_v2, %v5525_v30 }
 0x124   : > { %v2424_v18 = vsub.f32 %v5662_v43, %v6209_v55  ;;  %v5696_v51 = vsub.f32 %v560_v40, %v5678_v12  ;;  %v4060_v50 = vpack.c.bf16 %v2528_v28, %v2516_v53  ;;  %v6215_v6 = vand.u32 4294901760, %v5674_v60  ;;  %v5699_v33 = vpop.eup %4342 }
 0x125   : > { %v2439_v56 = vsub.f32 %v5666_v59, %v6208_v4  ;;  %v5705_v30 = vsub.f32 %v568_v57, %v5682_v45  ;;  %v5708_v2 = vsub.f32 %v576_v63, %v5684_v58  ;;  %v5710_v44 = vand.u32 4294901760, %v584_v54  ;;  %v5713_v40 = vpop.eup %4344 }
 0x126   : > { %v2425_v41 = vand.u32 4294901760, %v2424_v18  ;;  %v6212_v49 = vand.u32 4294901760, %v5696_v51  ;;  %v363_v1 = vmul.f32 %v331_v16, %v331_v16  ;;  %v371_v53 = vmul.f32 %v339_v47, %v339_v47 }
 0x127   : > { %v4064_v28 = vpack.c.bf16 %v5616_v52, %v5614_v32  ;;  %v6217_v4 = vand.u32 4294901760, %v5705_v30  ;;  %v6216_v57 = vand.u32 4294901760, %v5687_v27  ;;  %v379_v55 = vmul.f32 -480.5, %v347_v39 }
 0x128   : > { %2426 = vmatprep.mubr.f32.mxu0 %v2425_v41  ;;  %v2430_v63 = vsub.f32 %v5696_v51, %v6212_v49  ;;  %4061 = vmatpush1.bf16.xpose.msra.mxu1 %v4060_v50  ;;  %v2459_v18 = vand.u32 4294901760, %v5708_v2  ;;  %v5724_v16 = vsub.f32 %v584_v54, %v5710_v44  ;;  %v843_v47 = vadd.f32 %v5699_v33, %v5690_v38  ;;  %v5728_v10 = vpop.eup %4346 }
 0x129   : > { %v2440_v29 = vand.u32 4294901760, %v2439_v56  ;;  %v2445_v39 = vsub.f32 %v5705_v30, %v6217_v4  ;;  %v2454_v41 = vsub.f32 %v5674_v60, %v6215_v6  ;;  %4071 = vmatprep.subr.bf16.mxu1 %v5527_v17  ;;  %v387_v50 = vmul.f32 -480.5, %v355_v42  ;;  %v5744_v21 = vpop.eup %4348 }
 0x12a   : > { %v2431_v49 = vand.u32 4294901760, %v2430_v63  ;;  %v4078_v54 = vpack.c.bf16 %v2496_v26, %v2484_v46  ;;  %v338_v56 = vsub.f32 %v5566_v61, %v4723_v19  ;;  %v844_v24 = vadd.f32 %v5713_v40, %v843_v47 }
 0x12b   : > { %v2469_v6 = vsub.f32 %v5687_v27, %v6216_v57  ;;  %v354_v42 = vmul.f32 %v5589_v11, %v5589_v11  ;;  %v395_v63 = vmul.f32 -480.5, %v363_v1  ;;  %v2446_v37 = vand.u32 4294901760, %v2445_v39 }
 0x12c   : > { %2432 = vmatmul.mubr.f32.vlgmr.msra.gmra.mrb[48].mxu0 %v2431_v49  ;;  %v2460_v19 = vsub.f32 %v5708_v2, %v2459_v18  ;;  %v2474_v46 = vand.u32 4294901760, %v5724_v16  ;;  %v845_v26 = vadd.f32 %v5728_v10, %v844_v24  ;;  %v2455_v47 = vand.u32 4294901760, %v2454_v41 }
 0x12d   : > { %4065 = vmatpush1.bf16.xpose.msra.mxu0 %v4064_v28  ;;  %2441 = vmatprep.mubr.f32.mxu0 %v2440_v29  ;;  %v403_v57 = vmul.f32 -480.5, %v371_v53  ;;  %v418_v4 = vmul.f32 1.442695, %v379_v55  ;;  %v434_v11 = vmul.f32 1.442695, %v387_v50  ;;  %v5763_v22 = vmul.f32 %v5744_v21, %v5535_v14 }
 0x12e   : > { %4067 = vmatprep.subr.bf16.mxu0 %v4066_v8  ;;  %v5767_v49 = vmul.f32 %v5744_v21, %v5542_v36  ;;  %v370_v1 = vmul.f32 %v338_v56, %v338_v56  ;;  %v846_v24 = vrot.slane %v845_v26, 4  ;;  %v386_v29 = vmul.f32 -480.5, %v354_v42 }
 0x12f   : > { %2589 = vmatmul.mubr.f32.vlgmr.msra.gmra.mrb[48].mxu1 %v5678_v12  ;;  %v394_v53 = vmul.f32 -480.5, %v362_v13  ;;  %4350 = vpow2.f32 %v418_v4  ;;  %v450_v55 = vmul.f32 1.442695, %v395_v63  ;;  %v2461_v28 = vand.u32 4294901760, %v2460_v19 }
 0x130   : > { %2447 = vmatmul.mubr.f32.gmra.mrb[50].mxu0 %v2446_v37  ;;  %v4068_v8 = vpack.c.bf16 %v5621_v3, %v5619_v20  ;;  %4073 = vmatpush1.bf16.xpose.msra.mxu1 %v5612_v25  ;;  %v2475_v14 = vsub.f32 %v5724_v16, %v2474_v46  ;;  %v847_v36 = vadd.f32 %v846_v24, %v845_v26  ;;  %v2470_v39 = vand.u32 4294901760, %v2469_v6 }
 0x131   : > { %2456 = vmatprep.mubr.f32.mxu0 %v2455_v47  ;;  %2594 = vmatprep.mubr.f32.mxu1 %v5654_v7  ;;  %4352 = vpow2.f32 %v434_v11  ;;  %v466_v41 = vmul.f32 1.442695, %v403_v57  ;;  %v314_v4 = vsub.f32 %v5566_v61, %v4716_v15  ;;  %v3067_v50 = vand.u32 4294901760, %v5763_v22 }
 0x132   : > { %4075 = vmatprep.subr.bf16.mxu1 %v5578_v23  ;;  %v3071_v56 = vand.u32 4294901760, %v5767_v49  ;;  %v848_v42 = vrot.slane %v847_v36, 2  ;;  %4354 = vpow2.f32 %v450_v55  ;;  %v402_v13 = vmul.f32 -480.5, %v370_v1 }
 0x133   : > { %2596 = vmatmul.mubr.f32.gmra.mrb[50].mxu1 %v5682_v45  ;;  %v432_v63 = vmul.f32 1.442695, %v386_v29  ;;  %4356 = vpow2.f32 %v466_v41  ;;  %v346_v6 = vmul.f32 %v314_v4, %v314_v4  ;;  %v2476_v37 = vand.u32 4294901760, %v2475_v14 }
 0x134   : > { %2462 = vmatmul.mubr.f32.gmra.mrb[52].mxu0 %v2461_v28  ;;  %2601 = vmatprep.mubr.f32.mxu1 %v5656_v31  ;;  %v448_v57 = vmul.f32 1.442695, %v394_v53  ;;  %v849_v15 = vadd.f32 %v848_v42, %v847_v36  ;;  %v5787_v19 = vsub.f32 %v5763_v22, %v3067_v50  ;;  %v5792_v26 = vsub.f32 %v5767_v49, %v3071_v56 }
 0x135   : > { %4069 = vmatpush1.bf16.xpose.msra.mxu0 %v4068_v8  ;;  %2471 = vmatprep.mubr.f32.mxu0 %v2470_v39  ;;  %v378_v61 = vmul.f32 -480.5, %v346_v6  ;;  %4358 = vpow2.f32 %v432_v63  ;;  %v464_v11 = vmul.f32 1.442695, %v402_v13  ;;  %v5798_v24 = vmul.f32 %v5744_v21, %v5547_v34 }
 0x136   : > { %4079 = vmatprep.subr.bf16.mxu0 %v4078_v54  ;;  %v850_v47 = vrot.slane %v849_v15, 1  ;;  %4360 = vpow2.f32 %v448_v57  ;;  %v6286_v53 = vand.u32 4294901760, %v5614_v32  ;;  %v6287_v55 = vand.u32 4294901760, %v5616_v52 }
 0x137   : > { %2603 = vmatmul.mubr.f32.gmra.mrb[52].mxu1 %v5684_v58  ;;  %v416_v1 = vmul.f32 1.442695, %v378_v61  ;;  %v5810_v8 = vmul.f32 %v5744_v21, %v5571_v9  ;;  %v6288_v14 = vand.u32 4294901760, %v5504_v0  ;;  %v6289_v34 = vand.u32 4294901760, %v5509_v62 }
 0x138   : > { %2477 = vmatmul.mubr.f32.gmra.mrb[54].mxu0 %v2476_v37  ;;  %4077 = vmatpush1.bf16.xpose.msra.mxu1 %v5640_v5  ;;  %v851_v54 = vadd.f32 %v850_v47, %v849_v15  ;;  %v4080_v28 = vpack.c.bf16 %v6287_v55, %v6286_v53  ;;  %v3202_v32 = vand.u32 4294901760, %v5787_v19  ;;  %v3214_v52 = vand.u32 4294901760, %v5792_v26 }
 0x139   : > { %v5800_v29 = vpop.eup %4350  ;;  %2697 = vmatprep.mubr.f32.mxu0 %v5662_v43  ;;  %2608 = vmatprep.mubr.f32.mxu1 %v5658_v48  ;;  %4362 = vpow2.f32 %v416_v1  ;;  %v4082_v36 = vpack.c.bf16 %v6289_v34, %v6288_v14  ;;  %v6290_v0 = vand.u32 4294901760, %v5662_v43  ;;  %v3075_v62 = vand.u32 4294901760, %v5798_v24 }
 0x13a   : > { %4087 = vmatprep.subr.bf16.mxu1 %v5527_v17  ;;  %4364 = vrcp.f32 %v851_v54  ;;  %v3079_v41 = vand.u32 4294901760, %v5810_v8  ;;  %v3203_v4 = vsub.f32 %v5787_v19, %v3202_v32  ;;  %v3215_v43 = vsub.f32 %v5792_v26, %v3214_v52 }
 0x13b   : > { %v5819_v39 = vpop.eup %4352  ;;  %2610 = vmatmul.mubr.f32.gmra.mrb[54].mxu1 %v5710_v44  ;;  %4366 = vpow2.f32 %v464_v11  ;;  %v6291_v13 = vand.u32 4294901760, %v5696_v51  ;;  %v5846_v63 = vsub.f32 %v5798_v24, %v3075_v62  ;;  %v6292_v57 = vand.u32 4294901760, %v5619_v20 }
 0x13c   : > { %v5822_v9 = vpop.eup %4354  ;;  %2700 = vmatmul.mubr.f32.vlgmr.msra.gmra.mrb[56].mxu0 %v5696_v51  ;;  %2807 = vmatprep.mubr.f32.mxu1 %v6290_v0  ;;  %v531_v17 = vadd.f32 %v5819_v39, %v5800_v29  ;;  %v6293_v15 = vand.u32 4294901760, %v5621_v3  ;;  %v6294_v51 = vand.u32 4294901760, %v5666_v59  ;;  %v5859_v47 = vsub.f32 %v5810_v8, %v3079_v41 }
 0x13d   : > { %v5830_v21 = vpop.eup %4356  ;;  %4081 = vmatpush1.bf16.xpose.msra.mxu0 %v4080_v28  ;;  %2706 = vmatprep.mubr.f32.mxu0 %v5666_v59  ;;  %v5868_v11 = vpack.c.bf16 %v3071_v56, %v3067_v50  ;;  %v3204_v20 = vand.u32 4294901760, %v3203_v4  ;;  %v3216_v1 = vand.u32 4294901760, %v3215_v43  ;;  %v6295_v59 = vand.u32 4294901760, %v5705_v30 }
 0x13e   : > { %4083 = vmatprep.subr.bf16.mxu0 %v4082_v36  ;;  %v532_v42 = vadd.f32 %v5822_v9, %v531_v17  ;;  %v4084_v61 = vpack.c.bf16 %v6293_v15, %v6292_v57  ;;  %v6296_v53 = vand.u32 4294901760, %v5674_v60  ;;  %v3226_v49 = vand.u32 4294901760, %v5846_v63 }
 0x13f   : > { %2811 = vmatmul.mubr.f32.vlgmr.msra.gmra.mrb[56].mxu1 %v6291_v13  ;;  %v5849_v37 = vpop.eup %4358  ;;  %v4102_v28 = vpack.c.bf16 %v3216_v1, %v3204_v20 }
 0x140   : > { %2709 = vmatmul.mubr.f32.gmra.mrb[58].mxu0 %v5705_v30  ;;  %4089 = vmatpush1.bf16.xpose.msra.mxu1 %v5612_v25  ;;  %v533_v6 = vadd.f32 %v5830_v21, %v532_v42  ;;  %v5861_v25 = vpop.eup %4360 }
 0x141   : > { %2715 = vmatprep.mubr.f32.mxu0 %v5674_v60  ;;  %2818 = vmatprep.mubr.f32.mxu1 %v6294_v51  ;;  %v3238_v60 = vand.u32 4294901760, %v5859_v47 }
 0x142   : > { %4091 = vmatprep.subr.bf16.mxu1 %v5578_v23  ;;  %v534_v3 = vrot.slane %v533_v6, 4 }
 0x143   : > { %v5870_v54 = vpop.eup %4362  ;;  %2822 = vmatmul.mubr.f32.gmra.mrb[58].mxu1 %v6295_v59  ;;  %v3239_v13 = vsub.f32 %v5859_v47, %v3238_v60 }
 0x144   : > { %v4365_v24 = vpop.eup %4364  ;;  %2718 = vmatmul.mubr.f32.gmra.mrb[60].mxu0 %v5708_v2  ;;  %2829 = vmatprep.mubr.f32.mxu1 %v6296_v53  ;;  %v535_v23 = vadd.f32 %v534_v3, %v533_v6  ;;  %v522_v22 = vadd.f32 %v5870_v54, %v5849_v37 }
 0x145   : > { %v5880_v50 = vpop.eup %4366  ;;  %4085 = vmatpush1.bf16.xpose.msra.mxu0 %v4084_v61  ;;  %2724 = vmatprep.mubr.f32.mxu0 %v5687_v27  ;;  %v883_v30 = vmul.f32 %v4365_v24, %v5690_v38  ;;  %v891_v56 = vmul.f32 %v4365_v24, %v5699_v33  ;;  %v899_v55 = vmul.f32 %v4365_v24, %v5713_v40  ;;  %v3240_v1 = vand.u32 4294901760, %v3239_v13 }
 0x146   : > { %4095 = vmatprep.subr.bf16.mxu0 %v5868_v11  ;;  %v907_v8 = vmul.f32 %v4365_v24, %v5728_v10  ;;  %v536_v14 = vrot.slane %v535_v23, 2  ;;  %v523_v34 = vadd.f32 %v5861_v25, %v522_v22  ;;  %v5892_v38 = vpack.c.bf16 %v3079_v41, %v3075_v62 }
 0x147   : > { %2833 = vmatmul.mubr.f32.gmra.mrb[60].mxu1 %v2459_v18  ;;  %v3069_v36 = vand.u32 4294901760, %v883_v30  ;;  %v3073_v0 = vand.u32 4294901760, %v891_v56  ;;  %v3077_v33 = vand.u32 4294901760, %v899_v55  ;;  %v3227_v10 = vsub.f32 %v5846_v63, %v3226_v49 }
 0x148   : > { %2727 = vmatmul.mubr.f32.gmra.mrb[62].mxu0 %v5724_v16  ;;  %4093 = vmatpush1.bf16.xpose.msra.mxu1 %v5640_v5  ;;  %v3081_v40 = vand.u32 4294901760, %v907_v8  ;;  %v537_v17 = vadd.f32 %v536_v14, %v535_v23  ;;  %v524_v4 = vadd.f32 %v5880_v50, %v523_v34  ;;  %v6297_v41 = vand.u32 4294901760, %v5687_v27 }
 0x149   : > { %2938 = vmatprep.mubr.f32.mxu0 %v5652_v35  ;;  %v5901_v2 = vpack.c.bf16 %v3073_v0, %v3069_v36  ;;  %v5903_v18 = vsub.f32 %v883_v30, %v3069_v36  ;;  %v5905_v62 = vsub.f32 %v891_v56, %v3073_v0  ;;  %4103 = vmatprep.subr.bf16.mxu1 %v4102_v28 }
 0x14a   : > { %2840 = vmatprep.mubr.f32.mxu1 %v6297_v41  ;;  %v5909_v5 = vsub.f32 %v899_v55, %v3077_v33  ;;  %v5911_v43 = vsub.f32 %v907_v8, %v3081_v40  ;;  %v538_v42 = vrot.slane %v537_v17, 1  ;;  %v525_v15 = vrot.slane %v524_v4, 4 }
 0x14b   : > { %2844 = vmatmul.mubr.f32.gmra.mrb[62].mxu1 %v2474_v46  ;;  %v3208_v6 = vand.u32 4294901760, %v5903_v18  ;;  %v3220_v57 = vand.u32 4294901760, %v5905_v62  ;;  %v5943_v22 = vpack.c.bf16 %v3081_v40, %v3077_v33  ;;  %v4110_v28 = vpack.c.bf16 %v5792_v26, %v5787_v19 }
 0x14c   : > { %2940 = vmatmul.mubr.f32.vlgmr.msra.gmra.mrb[64].mxu0 %v5678_v12  ;;  %3039 = vmatprep.mubr.f32.mxu1 %v5652_v35  ;;  %v539_v27 = vadd.f32 %v538_v42, %v537_v17  ;;  %v3232_v61 = vand.u32 4294901760, %v5909_v5  ;;  %v3244_v51 = vand.u32 4294901760, %v5911_v43  ;;  %v526_v20 = vadd.f32 %v525_v15, %v524_v4 }
 0x14d   : > { %4097 = vmatpush1.bf16.xpose.msra.mxu0 %v5901_v2  ;;  %2945 = vmatprep.mubr.f32.mxu0 %v5654_v7  ;;  %v3209_v16 = vsub.f32 %v5903_v18, %v3208_v6  ;;  %v3221_v46 = vsub.f32 %v5905_v62, %v3220_v57  ;;  %v3228_v35 = vand.u32 4294901760, %v3227_v10  ;;  %v4128_v19 = vpack.c.bf16 %v3220_v57, %v3208_v6 }
 0x14e   : > { %4099 = vmatprep.subr.bf16.mxu0 %v5892_v38  ;;  %4368 = vrcp.f32 %v539_v27  ;;  %v3233_v3 = vsub.f32 %v5909_v5, %v3232_v61  ;;  %v527_v53 = vrot.slane %v526_v20, 2  ;;  %v3245_v23 = vsub.f32 %v5911_v43, %v3244_v51 }
 0x14f   : > { %3041 = vmatmul.mubr.f32.vlgmr.msra.gmra.mrb[64].mxu1 %v5678_v12  ;;  %v3210_v59 = vand.u32 4294901760, %v3209_v16  ;;  %v3222_v24 = vand.u32 4294901760, %v3221_v46  ;;  %v4106_v55 = vpack.c.bf16 %v3240_v1, %v3228_v35  ;;  %v4130_v26 = vpack.c.bf16 %v3238_v60, %v3226_v49 }
 0x150   : > { %2947 = vmatmul.mubr.f32.gmra.mrb[66].mxu0 %v5682_v45  ;;  %3046 = vmatprep.mubr.f32.mxu1 %v5654_v7  ;;  %v528_v56 = vadd.f32 %v527_v53, %v526_v20  ;;  %v3234_v8 = vand.u32 4294901760, %v3233_v3  ;;  %v3246_v14 = vand.u32 4294901760, %v3245_v23 }
 0x151   : > { %2952 = vmatprep.mubr.f32.mxu0 %v5656_v31  ;;  %v4104_v30 = vpack.c.bf16 %v3222_v24, %v3210_v59 }
 0x152   : > { %v529_v12 = vrot.slane %v528_v56, 1  ;;  %v4108_v34 = vpack.c.bf16 %v3246_v14, %v3234_v8 }
 0x153   : > { %4105 = vmatpush1.bf16.xpose.msra.mxu1 %v4104_v30 }
 0x154   : > { %2954 = vmatmul.mubr.f32.gmra.mrb[68].mxu0 %v5684_v58  ;;  %3048 = vmatmul.mubr.f32.gmra.mrb[66].mxu1 %v5682_v45  ;;  %v530_v7 = vadd.f32 %v529_v12, %v528_v56 }
 0x155   : > { %4101 = vmatpush1.bf16.xpose.msra.mxu0 %v5943_v22  ;;  %2959 = vmatprep.mubr.f32.mxu0 %v5658_v48 }
 0x156   : > { %3053 = vmatprep.mubr.f32.mxu1 %v5656_v31  ;;  %4107 = vmatprep.subr.bf16.mxu1 %v4106_v55  ;;  %4370 = vrcp.f32 %v530_v7  ;;  %v4112_v55 = vpack.c.bf16 %v5905_v62, %v5903_v18  ;;  %v4114_v7 = vpack.c.bf16 %v5859_v47, %v5846_v63 }
 0x157   : > { %4111 = vmatprep.subr.bf16.mxu0 %v4110_v28 }
 0x158   : > { %v4369_v36 = vpop.eup %4368  ;;  %2961 = vmatmul.mubr.f32.gmra.mrb[70].mxu0 %v5710_v44  ;;  %3055 = vmatmul.mubr.f32.gmra.mrb[68].mxu1 %v5684_v58 }
 0x159   : > { %v563_v0 = vmul.f32 %v4369_v36, %v5800_v29  ;;  %3060 = vmatprep.mubr.f32.mxu1 %v5658_v48  ;;  %v571_v45 = vmul.f32 %v4369_v36, %v5819_v39  ;;  %v579_v31 = vmul.f32 %v4369_v36, %v5822_v9  ;;  %v587_v39 = vmul.f32 %v4369_v36, %v5830_v21 }
 0x15b   : > { %v5957_v33 = vand.u32 4294901760, %v563_v0  ;;  %4109 = vmatpush1.bf16.xpose.msra.mxu1 %v4108_v34  ;;  %v5959_v40 = vand.u32 4294901760, %v571_v45  ;;  %v5972_v29 = vand.u32 4294901760, %v579_v31  ;;  %v5984_v16 = vand.u32 4294901760, %v587_v39 }
 0x15c   : > { %3062 = vmatmul.mubr.f32.gmra.mrb[70].mxu1 %v5710_v44  ;;  %4119 = vmatprep.subr.bf16.mxu1 %v5868_v11 }
 0x15d   : > { %v5965_v17 = vsub.f32 %v563_v0, %v5957_v33  ;;  %3305 = vmatprep.mubr.f32.mxu1 %v5957_v33  ;;  %v5970_v58 = vsub.f32 %v571_v45, %v5959_v40  ;;  %v5982_v27 = vsub.f32 %v579_v31, %v5972_v29  ;;  %v6006_v3 = vsub.f32 %v587_v39, %v5984_v16 }
 0x15f   : > { %v3141_v48 = vand.u32 4294901760, %v5965_v17  ;;  %v3156_v15 = vand.u32 4294901760, %v5970_v58  ;;  %v3171_v1 = vand.u32 4294901760, %v5982_v27  ;;  %v3186_v8 = vand.u32 4294901760, %v6006_v3 }
 0x160   : > { %v4371_v4 = vpop.eup %4370 }
 0x161   : > { %v3142_v9 = vsub.f32 %v5965_v17, %v3141_v48  ;;  %v562_v44 = vmul.f32 %v4371_v4, %v5870_v54  ;;  %v570_v10 = vmul.f32 %v4371_v4, %v5849_v37  ;;  %v578_v41 = vmul.f32 %v4371_v4, %v5861_v25 }
 0x162   : > { %v586_v42 = vmul.f32 %v4371_v4, %v5880_v50  ;;  %v3157_v35 = vsub.f32 %v5970_v58, %v3156_v15  ;;  %v3172_v28 = vsub.f32 %v5982_v27, %v3171_v1  ;;  %v3187_v31 = vsub.f32 %v6006_v3, %v3186_v8 }
 0x163   : > { %v3143_v13 = vand.u32 4294901760, %v3142_v9  ;;  %v5986_v21 = vand.u32 4294901760, %v562_v44  ;;  %v5988_v46 = vand.u32 4294901760, %v570_v10  ;;  %v5990_v20 = vand.u32 4294901760, %v578_v41 }
 0x164   : > { %v6000_v50 = vand.u32 4294901760, %v586_v42  ;;  %v3158_v12 = vand.u32 4294901760, %v3157_v35  ;;  %v3173_v45 = vand.u32 4294901760, %v3172_v28  ;;  %v4116_v9 = vpack.c.bf16 %v5911_v43, %v5909_v5 }
 0x165   : > { %3144 = vmatprep.mubr.f32.mxu0 %v3143_v13  ;;  %v3146_v37 = vsub.f32 %v562_v44, %v5986_v21  ;;  %v5994_v25 = vsub.f32 %v570_v10, %v5988_v46  ;;  %v5997_v54 = vsub.f32 %v578_v41, %v5990_v20  ;;  %3307 = vmatmul.mubr.f32.vlgmr.msra.gmra.mrb[72].mxu1 %v5986_v21  ;;  %v3188_v44 = vand.u32 4294901760, %v3187_v31 }
 0x166   : > { %4121 = vmatpush1.bf16.xpose.msra.mxu1 %v5901_v2  ;;  %3312 = vmatprep.mubr.f32.mxu1 %v5959_v40  ;;  %v6014_v56 = vsub.f32 %v586_v42, %v6000_v50  ;;  %v4126_v10 = vpack.c.bf16 %v3214_v52, %v3202_v32  ;;  %v4132_v32 = vpack.c.bf16 %v3244_v51, %v3232_v61 }
 0x167   : > { %v3147_v59 = vand.u32 4294901760, %v3146_v37  ;;  %v3162_v24 = vand.u32 4294901760, %v5994_v25  ;;  %4123 = vmatprep.subr.bf16.mxu1 %v5892_v38  ;;  %v3177_v30 = vand.u32 4294901760, %v5997_v54 }
 0x168   : > { %v3192_v0 = vand.u32 4294901760, %v6014_v56 }
 0x169   : > { %v3148_v53 = vsub.f32 %v3146_v37, %v3147_v59  ;;  %v3163_v23 = vsub.f32 %v5994_v25, %v3162_v24  ;;  %3314 = vmatmul.mubr.f32.gmra.mrb[74].mxu1 %v5988_v46  ;;  %v3178_v36 = vsub.f32 %v5997_v54, %v3177_v30 }
 0x16a   : > { %3319 = vmatprep.mubr.f32.mxu1 %v5972_v29  ;;  %v3193_v4 = vsub.f32 %v6014_v56, %v3192_v0 }
 0x16b   : > { %v3149_v14 = vand.u32 4294901760, %v3148_v53  ;;  %v3164_v34 = vand.u32 4294901760, %v3163_v23  ;;  %v3179_v39 = vand.u32 4294901760, %v3178_v36 }
 0x16c   : > { %v3194_v41 = vand.u32 4294901760, %v3193_v4 }
 0x16d   : > { %3150 = vmatmul.mubr.f32.vlgmr.msra.gmra.mrb[72].mxu0 %v3149_v14  ;;  %3321 = vmatmul.mubr.f32.gmra.mrb[76].mxu1 %v5990_v20 }
 0x16e   : > { %4113 = vmatpush1.bf16.xpose.msra.mxu0 %v4112_v55  ;;  %3159 = vmatprep.mubr.f32.mxu0 %v3158_v12 }
 0x16f   : > { %4115 = vmatprep.subr.bf16.mxu0 %v4114_v7  ;;  %4125 = vmatpush1.bf16.xpose.msra.mxu1 %v5943_v22 }
 0x170   : > { %3326 = vmatprep.mubr.f32.mxu1 %v5984_v16  ;;  %4135 = vmatprep.subr.bf16.mxu1 %v5868_v11 }
 0x171   : > { %3165 = vmatmul.mubr.f32.gmra.mrb[74].mxu0 %v3164_v34  ;;  %3328 = vmatmul.mubr.f32.gmra.mrb[78].mxu1 %v6000_v50 }
 0x172   : > { %3174 = vmatprep.mubr.f32.mxu0 %v3173_v45  ;;  %3525 = vmatprep.mubr.f32.mxu1 %v3141_v48 }
 0x175   : > { %3180 = vmatmul.mubr.f32.gmra.mrb[76].mxu0 %v3179_v39 }
 0x176   : > { %4117 = vmatpush1.bf16.xpose.msra.mxu0 %v4116_v9  ;;  %3189 = vmatprep.mubr.f32.mxu0 %v3188_v44 }
 0x177   : > { %4127 = vmatprep.subr.bf16.mxu0 %v4126_v10  ;;  %3529 = vmatmul.mubr.f32.vlgmr.msra.gmra.mrb[80].mxu1 %v3147_v59 }
 0x178   : > { %4137 = vmatpush1.bf16.xpose.msra.mxu1 %v5901_v2  ;;  %3536 = vmatprep.mubr.f32.mxu1 %v3156_v15 }
 0x179   : > { %3195 = vmatmul.mubr.f32.gmra.mrb[78].mxu0 %v3194_v41  ;;  %4139 = vmatprep.subr.bf16.mxu1 %v5892_v38 }
 0x17a   : > { %3415 = vmatprep.mubr.f32.mxu0 %v5965_v17 }
 0x17b   : > { %3540 = vmatmul.mubr.f32.gmra.mrb[82].mxu1 %v3162_v24 }
 0x17c   : > { %3547 = vmatprep.mubr.f32.mxu1 %v3171_v1 }
 0x17d   : > { %3418 = vmatmul.mubr.f32.vlgmr.msra.gmra.mrb[80].mxu0 %v3146_v37 }
 0x17e   : > { %4129 = vmatpush1.bf16.xpose.msra.mxu0 %v4128_v19  ;;  %3424 = vmatprep.mubr.f32.mxu0 %v5970_v58 }
 0x17f   : > { %4131 = vmatprep.subr.bf16.mxu0 %v4130_v26  ;;  %3551 = vmatmul.mubr.f32.gmra.mrb[84].mxu1 %v3177_v30  ;;  %v997_v52 = vpop.f32.mrb[0].mxu0 }
 0x180   : > { %4141 = vmatpush1.bf16.xpose.msra.mxu1 %v5943_v22  ;;  %3558 = vmatprep.mubr.f32.mxu1 %v3186_v8  ;;  %v999_v63 = vpop.f32.mrb[1].mxu0 }
 0x181   : > { %3427 = vmatmul.mubr.f32.gmra.mrb[82].mxu0 %v5994_v25 }
 0x182   : > { %3433 = vmatprep.mubr.f32.mxu0 %v5982_v27 }
 0x183   : > { %3562 = vmatmul.mubr.f32.gmra.mrb[86].mxu1 %v3192_v0  ;;  %v1012_v47 = vpop.f32.mrb[2].mxu0 }
 0x184   : > { %3757 = vmatprep.mubr.f32.mxu1 %v5957_v33  ;;  %v1014_v11 = vpop.f32.mrb[3].mxu0 }
 0x185   : > { %3436 = vmatmul.mubr.f32.gmra.mrb[84].mxu0 %v5997_v54 }
 0x186   : > { %4133 = vmatpush1.bf16.xpose.msra.mxu0 %v4132_v32  ;;  %3442 = vmatprep.mubr.f32.mxu0 %v6006_v3 }
 0x187   : > { %3759 = vmatmul.mubr.f32.vlgmr.msra.gmra.mrb[88].mxu1 %v5986_v21  ;;  %v1154_v49 = vpop.f32.mrb[0].mxu1  ;;  %v1027_v60 = vpop.f32.mrb[4].mxu0 }
 0x188   : > { %3764 = vmatprep.mubr.f32.mxu1 %v5959_v40  ;;  %v1155_v38 = vadd.f32 %v1154_v49, %v997_v52  ;;  %v1156_v2 = vpop.f32.mrb[1].mxu1  ;;  %v1029_v18 = vpop.f32.mrb[5].mxu0 }
 0x189   : > { %3445 = vmatmul.mubr.f32.gmra.mrb[86].mxu0 %v6014_v56 }
 0x18a   : > { %3656 = vmatprep.mubr.f32.mxu0 %v5957_v33 }
 0x18b   : > { %3766 = vmatmul.mubr.f32.gmra.mrb[90].mxu1 %v5988_v46  ;;  %v1161_v62 = vpop.f32.mrb[2].mxu1  ;;  %v1042_v5 = vpop.f32.mrb[6].mxu0 }
 0x18c   : > { %3771 = vmatprep.mubr.f32.mxu1 %v5972_v29  ;;  %v1162_v43 = vadd.f32 %v1161_v62, %v1012_v47  ;;  %v1163_v6 = vpop.f32.mrb[3].mxu1  ;;  %v1044_v57 = vpop.f32.mrb[7].mxu0 }
 0x18d   : > { %3658 = vmatmul.mubr.f32.vlgmr.msra.gmra.mrb[88].mxu0 %v5986_v21 }
 0x18e   : > { %3663 = vmatprep.mubr.f32.mxu0 %v5959_v40 }
 0x18f   : > { %3773 = vmatmul.mubr.f32.gmra.mrb[92].mxu1 %v5990_v20  ;;  %v1168_v61 = vpop.f32.mrb[4].mxu1  ;;  %v1265_v51 = vpop.f32.mrb[8].mxu0 }
 0x190   : > { %3778 = vmatprep.mubr.f32.mxu1 %v5984_v16  ;;  %v1169_v22 = vadd.f32 %v1168_v61, %v1027_v60  ;;  %v1266_v33 = vadd.f32 %v1265_v51, %v1155_v38  ;;  %v1170_v40 = vpop.f32.mrb[5].mxu1  ;;  %v1267_v17 = vpop.f32.mrb[9].mxu0 }
 0x191   : > { %3665 = vmatmul.mubr.f32.gmra.mrb[90].mxu0 %v5988_v46 }
 0x192   : > { %3670 = vmatprep.mubr.f32.mxu0 %v5972_v29 }
 0x193   : > { %3780 = vmatmul.mubr.f32.gmra.mrb[94].mxu1 %v6000_v50  ;;  %v1175_v48 = vpop.f32.mrb[6].mxu1 }
 0x194   : > { %v1274_v58 = vpop.f32.mrb[10].mxu0  ;;  %v1176_v42 = vadd.f32 %v1175_v48, %v1042_v5  ;;  %v1177_v15 = vpop.f32.mrb[7].mxu1 }
 0x195   : > { %3672 = vmatmul.mubr.f32.gmra.mrb[92].mxu0 %v5990_v20  ;;  %v1275_v13 = vadd.f32 %v1274_v58, %v1162_v43  ;;  %v1276_v27 = vpop.f32.mrb[11].mxu0 }
 0x196   : > { %3677 = vmatprep.mubr.f32.mxu0 %v5984_v16 }
 0x198   : > { %v1283_v29 = vpop.f32.mrb[12].mxu0 }
 0x199   : > { %3679 = vmatmul.mubr.f32.gmra.mrb[94].mxu0 %v6000_v50  ;;  %v1284_v46 = vadd.f32 %v1283_v29, %v1169_v22  ;;  %v1285_v54 = vpop.f32.mrb[13].mxu0 }
 0x19a   : > { %v1376_v21 = vpop.f32.mrb[8].mxu1 }
 0x19b   : > { %v1377_v37 = vadd.f32 %v1376_v21, %v1266_v33  ;;  %v1378_v25 = vpop.f32.mrb[9].mxu1 }
 0x19c   : > { %v1292_v35 = vpop.f32.mrb[14].mxu0 }
 0x19d   : > { %v1293_v3 = vadd.f32 %v1292_v35, %v1176_v42  ;;  %v1294_v16 = vpop.f32.mrb[15].mxu0 }
 0x19f   : > { %v1387_v1 = vpop.f32.mrb[10].mxu1 }
 0x1a0   : > { %v1388_v20 = vadd.f32 %v1387_v1, %v1275_v13  ;;  %v1389_v59 = vpop.f32.mrb[11].mxu1 }
 0x1a1   : > { %v1505_v53 = vpop.f32.mrb[16].mxu0 }
 0x1a2   : > { %v1506_v30 = vadd.f32 %v1505_v53, %v1377_v37  ;;  %v1507_v55 = vpop.f32.mrb[17].mxu0 }
 0x1a3   : > { %v1398_v24 = vpop.f32.mrb[12].mxu1 }
 0x1a4   : > { %v1399_v23 = vadd.f32 %v1398_v24, %v1284_v46  ;;  %v1400_v56 = vpop.f32.mrb[13].mxu1 }
 0x1a5   : > { %v1512_v28 = vpop.f32.mrb[18].mxu0 }
 0x1a6   : > { %v1513_v14 = vadd.f32 %v1512_v28, %v1388_v20  ;;  %v1514_v7 = vpop.f32.mrb[19].mxu0 }
 0x1a7   : > { %v1409_v12 = vpop.f32.mrb[14].mxu1 }
 0x1a8   : > { %v1410_v50 = vadd.f32 %v1409_v12, %v1293_v3  ;;  %v1411_v8 = vpop.f32.mrb[15].mxu1 }
 0x1a9   : > { %v1519_v36 = vpop.f32.mrb[20].mxu0 }
 0x1aa   : > { %v1520_v31 = vadd.f32 %v1519_v36, %v1399_v23  ;;  %v1521_v39 = vpop.f32.mrb[21].mxu0 }
 0x1ab   : > { %v1606_v34 = vpop.f32.mrb[16].mxu1 }
 0x1ac   : > { %v1607_v0 = vadd.f32 %v1606_v34, %v1506_v30  ;;  %v1608_v45 = vpop.f32.mrb[17].mxu1 }
 0x1ad   : > { %v1526_v4 = vpop.f32.mrb[22].mxu0 }
 0x1ae   : > { %v1527_v44 = vadd.f32 %v1526_v4, %v1410_v50  ;;  %v1528_v19 = vpop.f32.mrb[23].mxu0 }
 0x1af   : > { %v1613_v9 = vpop.f32.mrb[18].mxu1  ;;  %v4522_v19 = vmov 0.0  }
 0x1b0   : > { %v1614_v10 = vadd.f32 %v1613_v9, %v1513_v14  ;;  %v1615_v41 = vpop.f32.mrb[19].mxu1  ;;  %240 = vst.msk [vmem:[%s6078_s7] sm:$0xff] %vm239_vm0, %v4522_v19  ;;  %241 = vst.msk [vmem:[%s6078_s7 + $0x8] sm:$0xff] %vm239_vm0, %v4522_v19 }
 0x1b1   : > { %242 = vst.msk [vmem:[%s6078_s7 + $0x10] sm:$0xff] %vm239_vm0, %v4522_v19  ;;  %243 = vst.msk [vmem:[%s6078_s7 + $0x18] sm:$0xff] %vm239_vm0, %v4522_v19 }
 0x1b3   : > { %v1620_v26 = vpop.f32.mrb[20].mxu1 }
 0x1b4   : > { %v1621_v32 = vadd.f32 %v1620_v26, %v1520_v31  ;;  %v1622_v52 = vpop.f32.mrb[21].mxu1 }
 0x1b7   : > { %v1627_v63 = vpop.f32.mrb[22].mxu1 }
 0x1b8   : > { %v1628_v47 = vadd.f32 %v1627_v63, %v1527_v44  ;;  %v1629_v11 = vpop.f32.mrb[23].mxu1 }
 0x1bd   : > { %v1872_v49 = vpop.f32.mrb[24].mxu1 }
 0x1be   : > { %v1715_v60 = vpop.f32.mrb[24].mxu0  ;;  %v1874_v38 = vpop.f32.mrb[25].mxu1 }
 0x1bf   : > { %v1716_v2 = vadd.f32 %v1715_v60, %v1607_v0  ;;  %v1717_v18 = vpop.f32.mrb[25].mxu0 }
 0x1c1   : > { %v1873_v62 = vadd.f32 %v1872_v49, %v1716_v2  ;;  %v1879_v5 = vpop.f32.mrb[26].mxu1 }
 0x1c2   : > { %v1730_v43 = vpop.f32.mrb[26].mxu0  ;;  %v1881_v6 = vpop.f32.mrb[27].mxu1 }
 0x1c3   : > { %v1731_v57 = vadd.f32 %v1730_v43, %v1614_v10  ;;  %v1732_v61 = vpop.f32.mrb[27].mxu0 }
 0x1c5   : > { %v1880_v51 = vadd.f32 %v1879_v5, %v1731_v57  ;;  %v1886_v22 = vpop.f32.mrb[28].mxu1 }
 0x1c6   : > { %v1745_v33 = vpop.f32.mrb[28].mxu0  ;;  %v1888_v40 = vpop.f32.mrb[29].mxu1 }
 0x1c7   : > { %v1746_v17 = vadd.f32 %v1745_v33, %v1621_v32  ;;  %v1747_v48 = vpop.f32.mrb[29].mxu0 }
 0x1c9   : > { %v1887_v58 = vadd.f32 %v1886_v22, %v1746_v17  ;;  %v1893_v42 = vpop.f32.mrb[30].mxu1 }
 0x1ca   : > { %v1760_v13 = vpop.f32.mrb[30].mxu0  ;;  %v1895_v15 = vpop.f32.mrb[31].mxu1 }
 0x1cb   : > { %v1761_v27 = vadd.f32 %v1760_v13, %v1628_v47  ;;  %v1762_v29 = vpop.f32.mrb[31].mxu0 }
 0x1cd   : > { %v1894_v21 = vadd.f32 %v1893_v42, %v1761_v27 }
 0x1d0   : > { %v1983_v37 = vpop.f32.mrb[32].mxu0 }
 0x1d1   : > { %v2094_v46 = vpop.f32.mrb[32].mxu1  ;;  %v1984_v54 = vadd.f32 %v1983_v37, %v1873_v62  ;;  %v1985_v35 = vpop.f32.mrb[33].mxu0 }
 0x1d2   : > { %v2096_v25 = vpop.f32.mrb[33].mxu1 }
 0x1d3   : > { %v2095_v1 = vadd.f32 %v2094_v46, %v1984_v54 }
 0x1d4   : > { %v1992_v20 = vpop.f32.mrb[34].mxu0 }
 0x1d5   : > { %v2105_v3 = vpop.f32.mrb[34].mxu1  ;;  %v1993_v16 = vadd.f32 %v1992_v20, %v1880_v51  ;;  %v1994_v24 = vpop.f32.mrb[35].mxu0 }
 0x1d6   : > { %v2107_v59 = vpop.f32.mrb[35].mxu1 }
 0x1d7   : > { %v2106_v53 = vadd.f32 %v2105_v3, %v1993_v16 }
 0x1d8   : > { %v2001_v30 = vpop.f32.mrb[36].mxu0 }
 0x1d9   : > { %v2116_v23 = vpop.f32.mrb[36].mxu1  ;;  %v2002_v55 = vadd.f32 %v2001_v30, %v1887_v58  ;;  %v2003_v12 = vpop.f32.mrb[37].mxu0 }
 0x1da   : > { %v2118_v56 = vpop.f32.mrb[37].mxu1 }
 0x1db   : > { %v2117_v50 = vadd.f32 %v2116_v23, %v2002_v55 }
 0x1dc   : > { %v2010_v8 = vpop.f32.mrb[38].mxu0 }
 0x1dd   : > { %v2127_v28 = vpop.f32.mrb[38].mxu1  ;;  %v2011_v7 = vadd.f32 %v2010_v8, %v1894_v21  ;;  %v2012_v34 = vpop.f32.mrb[39].mxu0 }
 0x1de   : > { %v2129_v14 = vpop.f32.mrb[39].mxu1 }
 0x1df   : > { %v2128_v36 = vadd.f32 %v2127_v28, %v2011_v7 }
 0x1e0   : > { %v2223_v45 = vpop.f32.mrb[40].mxu0 }
 0x1e1   : > { %v2324_v0 = vpop.f32.mrb[40].mxu1  ;;  %v2224_v39 = vadd.f32 %v2223_v45, %v2095_v1  ;;  %v2225_v4 = vpop.f32.mrb[41].mxu0 }
 0x1e2   : > { %v2326_v31 = vpop.f32.mrb[41].mxu1 }
 0x1e3   : > { %v2325_v9 = vadd.f32 %v2324_v0, %v2224_v39 }
 0x1e4   : > { %v2230_v10 = vpop.f32.mrb[42].mxu0 }
 0x1e5   : > { %v2331_v44 = vpop.f32.mrb[42].mxu1  ;;  %v2231_v26 = vadd.f32 %v2230_v10, %v2106_v53  ;;  %v2232_v32 = vpop.f32.mrb[43].mxu0 }
 0x1e6   : > { %v2333_v41 = vpop.f32.mrb[43].mxu1 }
 0x1e7   : > { %v2332_v52 = vadd.f32 %v2331_v44, %v2231_v26 }
 0x1e8   : > { %v2237_v47 = vpop.f32.mrb[44].mxu0 }
 0x1e9   : > { %v2338_v63 = vpop.f32.mrb[44].mxu1  ;;  %v2238_v49 = vadd.f32 %v2237_v47, %v2117_v50  ;;  %v2239_v60 = vpop.f32.mrb[45].mxu0 }
 0x1ea   : > { %v2340_v11 = vpop.f32.mrb[45].mxu1 }
 0x1eb   : > { %v2339_v38 = vadd.f32 %v2338_v63, %v2238_v49 }
 0x1ec   : > { %v2244_v18 = vpop.f32.mrb[46].mxu0 }
 0x1ed   : > { %v2345_v2 = vpop.f32.mrb[46].mxu1  ;;  %v2245_v5 = vadd.f32 %v2244_v18, %v2128_v36  ;;  %v2246_v43 = vpop.f32.mrb[47].mxu0 }
 0x1ee   : > { %v2347_v62 = vpop.f32.mrb[47].mxu1 }
 0x1ef   : > { %v2346_v6 = vadd.f32 %v2345_v2, %v2245_v5 }
 0x1ff   : > { %v2433_v57 = vpop.f32.mrb[48].mxu0 }
 0x200   : > { %v2434_v61 = vadd.f32 %v2433_v57, %v2325_v9  ;;  %v2435_v51 = vpop.f32.mrb[49].mxu0 }
 0x202   : > { %v2590_v22 = vpop.f32.mrb[48].mxu1 }
 0x203   : > { %v2448_v33 = vpop.f32.mrb[50].mxu0  ;;  %v2591_v40 = vadd.f32 %v2590_v22, %v2434_v61  ;;  %v2592_v17 = vpop.f32.mrb[49].mxu1 }
 0x204   : > { %v2449_v48 = vadd.f32 %v2448_v33, %v2332_v52  ;;  %v2450_v58 = vpop.f32.mrb[51].mxu0 }
 0x206   : > { %v2597_v42 = vpop.f32.mrb[50].mxu1 }
 0x207   : > { %v2463_v13 = vpop.f32.mrb[52].mxu0  ;;  %v2598_v15 = vadd.f32 %v2597_v42, %v2449_v48  ;;  %v2599_v27 = vpop.f32.mrb[51].mxu1 }
 0x208   : > { %v2464_v29 = vadd.f32 %v2463_v13, %v2339_v38  ;;  %v2465_v21 = vpop.f32.mrb[53].mxu0 }
 0x20a   : > { %v2604_v46 = vpop.f32.mrb[52].mxu1 }
 0x20b   : > { %v2478_v37 = vpop.f32.mrb[54].mxu0  ;;  %v2605_v25 = vadd.f32 %v2604_v46, %v2464_v29  ;;  %v2606_v54 = vpop.f32.mrb[53].mxu1 }
 0x20c   : > { %v2479_v35 = vadd.f32 %v2478_v37, %v2346_v6  ;;  %v2480_v1 = vpop.f32.mrb[55].mxu0 }
 0x20e   : > { %v2611_v3 = vpop.f32.mrb[54].mxu1 }
 0x20f   : > { %v2701_v20 = vpop.f32.mrb[56].mxu0  ;;  %v2612_v59 = vadd.f32 %v2611_v3, %v2479_v35  ;;  %v2613_v16 = vpop.f32.mrb[55].mxu1 }
 0x210   : > { %v2702_v24 = vadd.f32 %v2701_v20, %v2591_v40  ;;  %v2703_v53 = vpop.f32.mrb[57].mxu0 }
 0x212   : > { %v2812_v23 = vpop.f32.mrb[56].mxu1 }
 0x213   : > { %v2710_v30 = vpop.f32.mrb[58].mxu0  ;;  %v2813_v56 = vadd.f32 %v2812_v23, %v2702_v24  ;;  %v2814_v55 = vpop.f32.mrb[57].mxu1 }
 0x214   : > { %v2711_v12 = vadd.f32 %v2710_v30, %v2598_v15  ;;  %v2712_v50 = vpop.f32.mrb[59].mxu0 }
 0x216   : > { %v2823_v28 = vpop.f32.mrb[58].mxu1 }
 0x217   : > { %v2719_v8 = vpop.f32.mrb[60].mxu0  ;;  %v2824_v14 = vadd.f32 %v2823_v28, %v2711_v12  ;;  %v2825_v7 = vpop.f32.mrb[59].mxu1 }
 0x218   : > { %v2720_v34 = vadd.f32 %v2719_v8, %v2605_v25  ;;  %v2721_v36 = vpop.f32.mrb[61].mxu0 }
 0x21a   : > { %v2834_v0 = vpop.f32.mrb[60].mxu1 }
 0x21b   : > { %v2728_v45 = vpop.f32.mrb[62].mxu0  ;;  %v2835_v31 = vadd.f32 %v2834_v0, %v2720_v34  ;;  %v2836_v39 = vpop.f32.mrb[61].mxu1 }
 0x21c   : > { %v2729_v4 = vadd.f32 %v2728_v45, %v2612_v59  ;;  %v2730_v9 = vpop.f32.mrb[63].mxu0 }
 0x21e   : > { %v2845_v44 = vpop.f32.mrb[62].mxu1 }
 0x21f   : > { %v2941_v10 = vpop.f32.mrb[64].mxu0  ;;  %v2846_v41 = vadd.f32 %v2845_v44, %v2729_v4  ;;  %v2847_v19 = vpop.f32.mrb[63].mxu1 }
 0x220   : > { %v2942_v26 = vadd.f32 %v2941_v10, %v2813_v56  ;;  %v2943_v32 = vpop.f32.mrb[65].mxu0 }
 0x222   : > { %v3042_v52 = vpop.f32.mrb[64].mxu1 }
 0x223   : > { %v2948_v63 = vpop.f32.mrb[66].mxu0  ;;  %v3043_v47 = vadd.f32 %v3042_v52, %v2942_v26  ;;  %v3044_v11 = vpop.f32.mrb[65].mxu1 }
 0x224   : > { %v2949_v49 = vadd.f32 %v2948_v63, %v2824_v14  ;;  %v2950_v60 = vpop.f32.mrb[67].mxu0 }
 0x227   : > { %v2955_v38 = vpop.f32.mrb[68].mxu0  ;;  %v3049_v2 = vpop.f32.mrb[66].mxu1 }
 0x228   : > { %v2956_v18 = vadd.f32 %v2955_v38, %v2835_v31  ;;  %v2957_v62 = vpop.f32.mrb[69].mxu0  ;;  %v3050_v5 = vadd.f32 %v3049_v2, %v2949_v49  ;;  %v3051_v43 = vpop.f32.mrb[67].mxu1 }
 0x22b   : > { %v2962_v6 = vpop.f32.mrb[70].mxu0  ;;  %v3056_v57 = vpop.f32.mrb[68].mxu1 }
 0x22c   : > { %v2963_v61 = vadd.f32 %v2962_v6, %v2846_v41  ;;  %v2964_v51 = vpop.f32.mrb[71].mxu0  ;;  %v3057_v22 = vadd.f32 %v3056_v57, %v2956_v18  ;;  %v3058_v33 = vpop.f32.mrb[69].mxu1  ;;  %v909_v6 = vld [vmem:[%s6078_s7] sm:$0xff] }
 0x22f   : > { %v3063_v40 = vpop.f32.mrb[70].mxu1 }
 0x230   : > { %v3064_v17 = vadd.f32 %v3063_v40, %v2963_v61  ;;  %v3065_v48 = vpop.f32.mrb[71].mxu1 }
 0x231   : > { %v910_v48 = vld [vmem:[%s6078_s7 + $0x8] sm:$0xff] }
 0x238   : > { %v3308_v58 = vpop.f32.mrb[72].mxu1 }
 0x239   : > { %v3310_v42 = vpop.f32.mrb[73].mxu1 }
 0x23c   : > { %v3315_v13 = vpop.f32.mrb[74].mxu1 }
 0x23d   : > { %v3317_v15 = vpop.f32.mrb[75].mxu1 }
 0x240   : > { %v3151_v27 = vpop.f32.mrb[72].mxu0  ;;  %v3322_v29 = vpop.f32.mrb[76].mxu1 }
 0x241   : > { %v3152_v21 = vadd.f32 %v3151_v27, %v3043_v47  ;;  %v3153_v46 = vpop.f32.mrb[73].mxu0  ;;  %v3324_v37 = vpop.f32.mrb[77].mxu1 }
 0x242   : > { %v911_v46 = vld [vmem:[%s6078_s7 + $0x10] sm:$0xff] }
 0x243   : > { %v3309_v25 = vadd.f32 %v3308_v58, %v3152_v21 }
 0x244   : > { %v3166_v54 = vpop.f32.mrb[74].mxu0  ;;  %v3329_v35 = vpop.f32.mrb[78].mxu1 }
 0x245   : > { %v3167_v1 = vadd.f32 %v3166_v54, %v3050_v5  ;;  %v3168_v3 = vpop.f32.mrb[75].mxu0  ;;  %v3331_v20 = vpop.f32.mrb[79].mxu1 }
 0x246   : > { %v912_v3 = vld [vmem:[%s6078_s7 + $0x18] sm:$0xff] }
 0x247   : > { %v3316_v59 = vadd.f32 %v3315_v13, %v3167_v1 }
 0x248   : > { %v3181_v16 = vpop.f32.mrb[76].mxu0 }
 0x249   : > { %v3182_v24 = vadd.f32 %v3181_v16, %v3057_v22  ;;  %v3183_v53 = vpop.f32.mrb[77].mxu0 }
 0x24a   : > { %v3530_v23 = vpop.f32.mrb[80].mxu1 }
 0x24b   : > { %v3323_v30 = vadd.f32 %v3322_v29, %v3182_v24  ;;  %v3532_v56 = vpop.f32.mrb[81].mxu1 }
 0x24c   : > { %v3196_v55 = vpop.f32.mrb[78].mxu0 }
 0x24d   : > { %v3197_v12 = vadd.f32 %v3196_v55, %v3064_v17  ;;  %v3198_v50 = vpop.f32.mrb[79].mxu0 }
 0x24e   : > { %v3541_v28 = vpop.f32.mrb[82].mxu1 }
 0x24f   : > { %v3330_v8 = vadd.f32 %v3329_v35, %v3197_v12  ;;  %v3543_v14 = vpop.f32.mrb[83].mxu1 }
 0x250   : > { %v3419_v7 = vpop.f32.mrb[80].mxu0 }
 0x251   : > { %v3420_v34 = vadd.f32 %v3419_v7, %v3309_v25  ;;  %v3421_v36 = vpop.f32.mrb[81].mxu0 }
 0x252   : > { %v3552_v0 = vpop.f32.mrb[84].mxu1 }
 0x253   : > { %v3531_v45 = vadd.f32 %v3530_v23, %v3420_v34  ;;  %v3554_v31 = vpop.f32.mrb[85].mxu1 }
 0x254   : > { %v3428_v39 = vpop.f32.mrb[82].mxu0 }
 0x255   : > { %v3429_v4 = vadd.f32 %v3428_v39, %v3316_v59  ;;  %v3430_v9 = vpop.f32.mrb[83].mxu0 }
 0x256   : > { %v3563_v44 = vpop.f32.mrb[86].mxu1 }
 0x257   : > { %v3542_v10 = vadd.f32 %v3541_v28, %v3429_v4  ;;  %v3565_v41 = vpop.f32.mrb[87].mxu1 }
 0x258   : > { %v3437_v19 = vpop.f32.mrb[84].mxu0 }
 0x259   : > { %v3438_v26 = vadd.f32 %v3437_v19, %v3323_v30  ;;  %v3439_v32 = vpop.f32.mrb[85].mxu0 }
 0x25a   : > { %v3760_v52 = vpop.f32.mrb[88].mxu1 }
 0x25b   : > { %v3553_v63 = vadd.f32 %v3552_v0, %v3438_v26  ;;  %v3762_v47 = vpop.f32.mrb[89].mxu1 }
 0x25c   : > { %v3446_v11 = vpop.f32.mrb[86].mxu0 }
 0x25d   : > { %v3447_v49 = vadd.f32 %v3446_v11, %v3330_v8  ;;  %v3448_v60 = vpop.f32.mrb[87].mxu0 }
 0x25e   : > { %v3767_v38 = vpop.f32.mrb[90].mxu1 }
 0x25f   : > { %v3564_v2 = vadd.f32 %v3563_v44, %v3447_v49  ;;  %v3769_v18 = vpop.f32.mrb[91].mxu1 }
 0x260   : > { %v3659_v62 = vpop.f32.mrb[88].mxu0 }
 0x261   : > { %v3660_v5 = vadd.f32 %v3659_v62, %v3531_v45  ;;  %v3661_v43 = vpop.f32.mrb[89].mxu0 }
 0x262   : > { %v3774_v57 = vpop.f32.mrb[92].mxu1 }
 0x263   : > { %v3761_v61 = vadd.f32 %v3760_v52, %v3660_v5  ;;  %v3776_v51 = vpop.f32.mrb[93].mxu1 }
 0x264   : > { %v3666_v22 = vpop.f32.mrb[90].mxu0 }
 0x265   : > { %v3667_v33 = vadd.f32 %v3666_v22, %v3542_v10  ;;  %v3668_v40 = vpop.f32.mrb[91].mxu0  ;;  %v3785_v17 = vadd.f32 %v3761_v61, %v909_v6 }
 0x266   : > { %v3781_v58 = vpop.f32.mrb[94].mxu1 }
 0x267   : > { %3790 = vst.msk [vmem:[%s6078_s7] sm:$0xff] %vm239_vm0, %v3785_v17  ;;  %v3768_v42 = vadd.f32 %v3767_v38, %v3667_v33  ;;  %v3783_v13 = vpop.f32.mrb[95].mxu1 }
 0x268   : > { %v3673_v15 = vpop.f32.mrb[92].mxu0 }
 0x269   : > { %v3674_v27 = vadd.f32 %v3673_v15, %v3553_v63  ;;  %v3675_v29 = vpop.f32.mrb[93].mxu0  ;;  %v3786_v21 = vadd.f32 %v3768_v42, %v910_v48 }
 0x26b   : > { %3791 = vst.msk [vmem:[%s6078_s7 + $0x8] sm:$0xff] %vm239_vm0, %v3786_v21  ;;  %v3775_v37 = vadd.f32 %v3774_v57, %v3674_v27 }
 0x26c   : > { %v3680_v25 = vpop.f32.mrb[94].mxu0 }
 0x26d   : > { %v3681_v54 = vadd.f32 %v3680_v25, %v3564_v2  ;;  %v3787_v35 = vadd.f32 %v3775_v37, %v911_v46  ;;  %v3682_v1 = vpop.f32.mrb[95].mxu0 }
 0x26f   : > { %3792 = vst.msk [vmem:[%s6078_s7 + $0x10] sm:$0xff] %vm239_vm0, %v3787_v35  ;;  %v3782_v20 = vadd.f32 %v3781_v58, %v3681_v54 }
 0x271   : > { %v3788_v59 = vadd.f32 %v3782_v20, %v912_v3 }
 0x273   : > { %3793 = vst.msk [vmem:[%s6078_s7 + $0x18] sm:$0xff] %vm239_vm0, %v3788_v59 }
 0x274   : > { %4445 = shalt.err (!%p4442_p2)
}
 0x275   : > { %s4446_s8 = scalar_lea.hbm %s6103_s28, 512  ;;  %s4450_s6 = scalar_lea.hbm %s6158_s2, 1024 }
 0x276   : > { %p4447_p9 = scmp.ne.s32.totalorder %s6103_s28, %s4446_s8  ;;  %p4451_p6 = scmp.lt.u32.totalorder %s6103_s28, %s6158_s2 }
 0x277   : > { %p4452_p13 = scmp.lt.u32.totalorder %s4450_s6, %s4446_s8  ;;  %p4454_p8 = scmp.lt.u32.totalorder %s4446_s8, %s6103_s28 }
 0x278   : > { %p4448_p11 = pnand %p4447_p9, %p6298_p0 }
 0x279   : > { %p4453_p5 = por %p4452_p13, %p4451_p6 }
 0x27a   : > { %p4449_p3 = pneg %p4448_p11 }
 0x27b   : > { %p4455_p7 = por %p4454_p8, %p4453_p5 }
 0x27d   : > { %p4456_p4 = pnand %p4455_p7, %p4449_p3 }
 0x27f   : > { %4459 = shalt.err (!%p4456_p4)
}
 0x280   : > { %s4524_s21 = smov 128   ;;  %s4525_s7 = smov 8  }
 0x281   : > { %4146 = dma.vmem_to_hbm [thread:$0]  (%p6298_p0), %s6105_s30, 512, %s6103_s28, %s3795_s29, %s4524_s21, %s4524_s21, %s4525_s7  }
 0x282 PF: > { %s3825_s19 = sand.u32 1, %s4498_s9   ;;  %p6299_p10 = scmp.ne.s32.totalorder %s6221_s24, 0 }
 0x283   : > { %p6300_p12 = scmp.ge.s32.totalorder %s4518_s14, 2  ;;  %s3826_s20 = scalar_lea.sflag [#allocation4], %s3825_s19 }
 0x285   : > { %p4156_p1 = pnand %p6300_p12, %p6299_p10 }
 0x287   : > { %4493 = dma.done.wait (!%p4156_p1), %s3826_s20, 512  }
 0x288   : > { %4495 = vsyncadd (!%p4156_p1), %s3826_s20, 4294966784  ;;  %s21_s14 = sadd.s32 1, %s4518_s14   ;;  %s6301_s9 = smov %s4502_s10 }
 0x289   : > { %p18_p2 = scmp.ge.s32.totalorder %s21_s14, 4   ;;  %s6302_s10 = smov %s4506_s11 }
 0x28a   : > { %s6303_s11 = smov %s4597_s23  ;;  %s6304_s12 = smov %s4514_s13 }
 0x28b   : > { %s6305_s13 = smov %s6307_s17  ;;  %20 = sbr.rel (!%p18_p2) target bundleno = 8 (0x8), region = 90 }
 0x292   :  { %3831 = vsyncpa [#allocation3], 1 }
 0x293   :  { %3833 = vsyncpa [#allocation3 + $0x1], 1 }
 0x294   :  { %3834 = vsyncpa [#allocation6], 1 }
 0x295   :  { %3836 = vsyncpa [#allocation6 + $0x1], 1 }
 0x296   :  { %3837 = vsyncpa [#allocation4], 1 }
 0x297   :  { %3839 = vsyncpa [#allocation4 + $0x1], 1 }

</bundles_post_ra>
